<compile_context>
chip_gen: v7x
topology: tpu7x:2x2x1
jax: 0.10.0
libtpu: 0.0.40
codegen_flags: <defaults>
</compile_context>

<pallas_src>
from functools import partial

import jax
import jax.numpy as jnp
from jax.experimental import pallas as pl
from jax.experimental.pallas import tpu as pltpu


# ----------------------------------------------------------------------------
# Pallas kernel
# ----------------------------------------------------------------------------

def _input_proj_kernel(x_ref, w_ref, b_ref, o_ref, xs_ref, *, kh, kw, c_tile, sw):
    """3x3 'same' conv of nb single-channel images -> c_tile output channels.

    x_ref : (nb, W, H)                unpadded transposed image block (VMEM)
    w_ref : (Cout_pad * kh * kw,)     flattened Conv2d weights (SMEM scalars)
    b_ref : (Cout_pad,)               bias (SMEM scalars)
    o_ref : (nb, c_tile, W, H)        output block, PyTorch [N,Cout,W,H] layout
    xs_ref: (nb, kw, W + kh - 1, H)   VMEM scratch: lane-pre-shifted, row-padded
                                      copies of each image (built when c-block==0)
    """
    nb, W, H = x_ref.shape
    ph, pw = kh // 2, kw // 2
    n_taps = kh * kw
    n_strips = W // sw                       # sw chosen in wrapper to divide W

    # ---- Build the kw lane-shifted, zero-row-padded copies once per batch
    # block (channel grid axis is innermost & "arbitrary", so c==0 runs first
    # for every batch block on every core).  All later taps are pure sublane
    # slices of this scratch.
    @pl.when(pl.program_id(1) == 0)
    def _build():
        xs_ref[...] = jnp.zeros_like(xs_ref)          # zero borders / shifted-out lanes
        for b in range(nb):                           # static, nb small
            for kj in range(kw):
                d = kj - pw                           # lane shift of this copy
                if d == 0:
                    xs_ref[b, kj, ph:ph + W, :] = x_ref[b]
                elif d > 0:
                    xs_ref[b, kj, ph:ph + W, :H - d] = x_ref[b, :, d:]
                else:
                    xs_ref[b, kj, ph:ph + W, -d:] = x_ref[b, :, :H + d]

    c0 = pl.program_id(1) * c_tile                    # absolute base output channel

    # ---- Row-strip loop: bounds the live set to kh*kw taps of (sw, H).
    @pl.loop(0, n_strips)
    def _strip(s):
        r0 = pl.multiple_of(s * sw, sw)
        for b in range(nb):                           # static
            # kh*kw taps for this strip: sublane-offset slices only (lane shift
            # already done in the scratch).  Loaded once, reused for all channels.
            taps = [
                xs_ref[b, kj, pl.ds(r0 + ki, sw), :]
                for ki in range(kh)
                for kj in range(kw)
            ]
            for co in range(c_tile):                  # static unrolled
                cabs = c0 + co
                # bias folded into the first tap (saves a broadcast + add)
                acc = taps[0] * w_ref[cabs * n_taps] + b_ref[cabs]
                for t in range(1, n_taps):
                    acc = acc + w_ref[cabs * n_taps + t] * taps[t]
                o_ref[b, co, pl.ds(r0, sw), :] = acc


# ----------------------------------------------------------------------------
# Tiling heuristics
# ----------------------------------------------------------------------------

def _choose_tiling(N, Cout, W, H, kh, kw):
    """Pick (nb, c_tile) under a conservative VMEM budget (fits v5e/v6e/v7x)."""
    plane = W * H * 4                                  # one (W,H) f32 plane
    halo = kw * (W + kh - 1) * H * 4                   # per-image scratch copies
    budget = 12 << 20                                  # < v5e 16 MiB scoped default

    # channel tile with nb=1: 2*plane (in dbuf) + 2*c*plane (out dbuf) + halo
    c_max = (budget - 2 * plane - halo) // (2 * plane)
    c_tile = int(max(1, min(Cout, c_max, 16)))         # cap static unroll

    def usage(nb):
        return nb * (2 * plane + 2 * c_tile * plane + halo)

    nb = 1
    for cand in range(min(N, 8), 0, -1):               # largest divisor of N that fits
        if N % cand == 0 and usage(cand) <= budget:
            nb = cand
            break
    return nb, c_tile


# ----------------------------------------------------------------------------
# Wrapper
# ----------------------------------------------------------------------------

def input_projection_forward(images, weight, bias):
    """Forward pass of InputProjectionLayer.

    images: [N, H, W, 1] ; weight: [Cout, 1, kh, kw] ; bias: [Cout]
    returns: [N, Cout, W, H]  (== conv(torch.transpose(images, 3, 1)))
    """
    N, H, W, Cin = images.shape
    assert Cin == 1, "InputProjectionLayer expects a single input channel"
    Cout, _, kh, kw = weight.shape
    assert kh % 2 == 1 and kw % 2 == 1, "'same' padding implemented for odd kernels"

    # torch.transpose(images, 3, 1): [N,H,W,1] -> [N,1,W,H]; drop unit channel.
    # (No jnp.pad here any more — padding happens inside the kernel.)
    x_t = jnp.transpose(images[..., 0], (0, 2, 1)).astype(jnp.float32)   # [N, W, H]

    nb, c_tile = _choose_tiling(N, Cout, W, H, kh, kw)
    n_ct = pl.cdiv(Cout, c_tile)
    Cout_pad = n_ct * c_tile

    # Flattened weights / bias in SMEM; pad channels so c_tile need not divide Cout.
    w2d = weight.reshape(Cout, kh * kw).astype(jnp.float32)
    b1d = bias.astype(jnp.float32)
    if Cout_pad != Cout:
        w2d = jnp.pad(w2d, ((0, Cout_pad - Cout), (0, 0)))
        b1d = jnp.pad(b1d, (0, Cout_pad - Cout))
    w_flat = w2d.reshape(Cout_pad * kh * kw)

    sw = 8 if W % 8 == 0 else W                       # sublane strip size
    grid = (N // nb, n_ct)

    out = pl.pallas_call(
        partial(_input_proj_kernel, kh=kh, kw=kw, c_tile=c_tile, sw=sw),
        out_shape=jax.ShapeDtypeStruct((N, Cout_pad, W, H), jnp.float32),
        grid=grid,
        in_specs=[
            # Image block: constant across the channel axis -> stays resident.
            pl.BlockSpec((nb, W, H), lambda n, c: (n, 0, 0)),
            # Weights / bias: tiny, whole arrays as SMEM scalars.
            pl.BlockSpec(memory_space=pltpu.MemorySpace.SMEM),
            pl.BlockSpec(memory_space=pltpu.MemorySpace.SMEM),
        ],
        out_specs=pl.BlockSpec((nb, c_tile, W, H), lambda n, c: (n, c, 0, 0)),
        scratch_shapes=[pltpu.VMEM((nb, kw, W + kh - 1, H), jnp.float32)],
        compiler_params=pltpu.CompilerParams(
            # Batch axis parallel (disjoint reads across TCs), channel axis
            # arbitrary (scratch is built at c==0 and reused; image block is
            # constant over c, so splitting it would double HBM reads).
            dimension_semantics=("parallel", "arbitrary"),
            vmem_limit_bytes=32 * 1024 * 1024),
    )(x_t, w_flat, b1d)

    return out[:, :Cout] if Cout_pad != Cout else out


# ----------------------------------------------------------------------------
# Pure-JAX reference (for correctness check)
# ----------------------------------------------------------------------------

def input_projection_reference(images, weight, bias):
    x = jnp.transpose(images, (0, 3, 2, 1))            # torch.transpose(3, 1)
    out = jax.lax.conv_general_dilated(
        x.astype(jnp.float32), weight.astype(jnp.float32),
        window_strides=(1, 1), padding="SAME",
        dimension_numbers=("NCHW", "OIHW", "NCHW"))
    return out + bias.astype(jnp.float32)[None, :, None, None]


# ----------------------------------------------------------------------------
# Main
# ----------------------------------------------------------------------------

if __name__ == "__main__":
    N, Cout, H, W = 2, 4, 16, 16

    key = jax.random.PRNGKey(0)
    k_img, k_w, k_b = jax.random.split(key, 3)
    images = jax.random.normal(k_img, (N, H, W, 1), jnp.float32)
    weight = 0.1 * jax.random.normal(k_w, (Cout, 1, 3, 3), jnp.float32)
    bias = 0.1 * jax.random.normal(k_b, (Cout,), jnp.float32)

    fwd = jax.jit(input_projection_forward)
    out = jax.block_until_ready(fwd(images, weight, bias))
    assert out.shape == (N, Cout, W, H), out.shape
    assert bool(jnp.all(jnp.isfinite(out)))

    ref = jax.block_until_ready(input_projection_reference(images, weight, bias))
    max_err = float(jnp.max(jnp.abs(out - ref)))
    assert max_err < 1e-5, f"mismatch vs reference: max |err| = {max_err}"

    print("KERNEL_OK")
</pallas_src>

<mosaic_0001>
module attributes {stable_mosaic.version = 11 : i64} {
  func.func @_input_proj_kernel(%arg0: i32, %arg1: i32, %arg2: memref<2x16x16xf32, #tpu.memory_space<vmem>>, %arg3: memref<36xf32, #tpu.memory_space<smem>>, %arg4: memref<4xf32, #tpu.memory_space<smem>>, %arg5: memref<2x4x16x16xf32, #tpu.memory_space<vmem>>, %arg6: memref<2x3x18x16xf32, #tpu.memory_space<vmem>>) attributes {dimension_semantics = [#tpu.dimension_semantics<parallel>, #tpu.dimension_semantics<arbitrary>], iteration_bounds = array<i64: 1, 1>, scalar_prefetch = 0 : i64, scratch_operands = 1 : i64, tpu.core_type = #tpu.core_type<tc>, window_params = [{transform_indices = @transform_0, window_bounds = array<i64: 2, 16, 16>}, {transform_indices = @transform_1, window_bounds = array<i64: 36>}, {transform_indices = @transform_2, window_bounds = array<i64: 4>}, {transform_indices = @transform_3, window_bounds = array<i64: 2, 4, 16, 16>}]} {
    %c0_i32 = arith.constant 0 : i32
    %0 = arith.cmpi eq, %arg1, %c0_i32 : i32
    %1 = arith.extui %0 : i1 to i32
    %c0_i32_0 = arith.constant 0 : i32
    %2 = arith.cmpi ne, %1, %c0_i32_0 : i32
    scf.if %2 {
      %cst = arith.constant 0.000000e+00 : f32
      %5 = vector.broadcast %cst : f32 to vector<2x3x18x16xf32>
      %c0 = arith.constant 0 : index
      %c0_3 = arith.constant 0 : index
      %c0_4 = arith.constant 0 : index
      %c0_5 = arith.constant 0 : index
      %6 = vector.load %arg6[%c0, %c0_3, %c0_4, %c0_5] : memref<2x3x18x16xf32, #tpu.memory_space<vmem>>, vector<2x3x18x16xf32>
      tpu.vector_store %arg6[%c0, %c0_3, %c0_4, %c0_5], %5 {strides = array<i32>} : memref<2x3x18x16xf32, #tpu.memory_space<vmem>>, vector<2x3x18x16xf32>,
      %c0_6 = arith.constant 0 : index
      %c0_7 = arith.constant 0 : index
      %c0_8 = arith.constant 0 : index
      %7 = vector.load %arg2[%c0_6, %c0_7, %c0_8] : memref<2x16x16xf32, #tpu.memory_space<vmem>>, vector<1x16x15xf32>
      %8 = vector.shape_cast %7 : vector<1x16x15xf32> to vector<16x15xf32>
      %c0_9 = arith.constant 0 : index
      %c0_10 = arith.constant 0 : index
      %c1 = arith.constant 1 : index
      %c1_11 = arith.constant 1 : index
      %9 = vector.load %arg6[%c0_9, %c0_10, %c1, %c1_11] : memref<2x3x18x16xf32, #tpu.memory_space<vmem>>, vector<1x1x16x15xf32>
      %10 = vector.shape_cast %9 : vector<1x1x16x15xf32> to vector<16x15xf32>
      %11 = vector.shape_cast %8 : vector<16x15xf32> to vector<1x1x16x15xf32>
      tpu.vector_store %arg6[%c0_9, %c0_10, %c1, %c1_11], %11 {strides = array<i32>} : memref<2x3x18x16xf32, #tpu.memory_space<vmem>>, vector<1x1x16x15xf32>,
      %c0_12 = arith.constant 0 : index
      %c0_13 = arith.constant 0 : index
      %c0_14 = arith.constant 0 : index
      %12 = vector.load %arg2[%c0_12, %c0_13, %c0_14] : memref<2x16x16xf32, #tpu.memory_space<vmem>>, vector<1x16x16xf32>
      %13 = vector.shape_cast %12 : vector<1x16x16xf32> to vector<16x16xf32>
      %c0_15 = arith.constant 0 : index
      %c1_16 = arith.constant 1 : index
      %c1_17 = arith.constant 1 : index
      %c0_18 = arith.constant 0 : index
      %14 = vector.load %arg6[%c0_15, %c1_16, %c1_17, %c0_18] : memref<2x3x18x16xf32, #tpu.memory_space<vmem>>, vector<1x1x16x16xf32>
      %15 = vector.shape_cast %14 : vector<1x1x16x16xf32> to vector<16x16xf32>
      %16 = vector.shape_cast %13 : vector<16x16xf32> to vector<1x1x16x16xf32>
      tpu.vector_store %arg6[%c0_15, %c1_16, %c1_17, %c0_18], %16 {strides = array<i32>} : memref<2x3x18x16xf32, #tpu.memory_space<vmem>>, vector<1x1x16x16xf32>,
      %c0_19 = arith.constant 0 : index
      %c0_20 = arith.constant 0 : index
      %c1_21 = arith.constant 1 : index
      %17 = vector.load %arg2[%c0_19, %c0_20, %c1_21] : memref<2x16x16xf32, #tpu.memory_space<vmem>>, vector<1x16x15xf32>
      %18 = vector.shape_cast %17 : vector<1x16x15xf32> to vector<16x15xf32>
      %c0_22 = arith.constant 0 : index
      %c2 = arith.constant 2 : index
      %c1_23 = arith.constant 1 : index
      %c0_24 = arith.constant 0 : index
      %19 = vector.load %arg6[%c0_22, %c2, %c1_23, %c0_24] : memref<2x3x18x16xf32, #tpu.memory_space<vmem>>, vector<1x1x16x15xf32>
      %20 = vector.shape_cast %19 : vector<1x1x16x15xf32> to vector<16x15xf32>
      %21 = vector.shape_cast %18 : vector<16x15xf32> to vector<1x1x16x15xf32>
      tpu.vector_store %arg6[%c0_22, %c2, %c1_23, %c0_24], %21 {strides = array<i32>} : memref<2x3x18x16xf32, #tpu.memory_space<vmem>>, vector<1x1x16x15xf32>,
      %c1_25 = arith.constant 1 : index
      %c0_26 = arith.constant 0 : index
      %c0_27 = arith.constant 0 : index
      %22 = vector.load %arg2[%c1_25, %c0_26, %c0_27] : memref<2x16x16xf32, #tpu.memory_space<vmem>>, vector<1x16x15xf32>
      %23 = vector.shape_cast %22 : vector<1x16x15xf32> to vector<16x15xf32>
      %c1_28 = arith.constant 1 : index
      %c0_29 = arith.constant 0 : index
      %c1_30 = arith.constant 1 : index
      %c1_31 = arith.constant 1 : index
      %24 = vector.load %arg6[%c1_28, %c0_29, %c1_30, %c1_31] : memref<2x3x18x16xf32, #tpu.memory_space<vmem>>, vector<1x1x16x15xf32>
      %25 = vector.shape_cast %24 : vector<1x1x16x15xf32> to vector<16x15xf32>
      %26 = vector.shape_cast %23 : vector<16x15xf32> to vector<1x1x16x15xf32>
      tpu.vector_store %arg6[%c1_28, %c0_29, %c1_30, %c1_31], %26 {strides = array<i32>} : memref<2x3x18x16xf32, #tpu.memory_space<vmem>>, vector<1x1x16x15xf32>,
      %c1_32 = arith.constant 1 : index
      %c0_33 = arith.constant 0 : index
      %c0_34 = arith.constant 0 : index
      %27 = vector.load %arg2[%c1_32, %c0_33, %c0_34] : memref<2x16x16xf32, #tpu.memory_space<vmem>>, vector<1x16x16xf32>
      %28 = vector.shape_cast %27 : vector<1x16x16xf32> to vector<16x16xf32>
      %c1_35 = arith.constant 1 : index
      %c1_36 = arith.constant 1 : index
      %c1_37 = arith.constant 1 : index
      %c0_38 = arith.constant 0 : index
      %29 = vector.load %arg6[%c1_35, %c1_36, %c1_37, %c0_38] : memref<2x3x18x16xf32, #tpu.memory_space<vmem>>, vector<1x1x16x16xf32>
      %30 = vector.shape_cast %29 : vector<1x1x16x16xf32> to vector<16x16xf32>
      %31 = vector.shape_cast %28 : vector<16x16xf32> to vector<1x1x16x16xf32>
      tpu.vector_store %arg6[%c1_35, %c1_36, %c1_37, %c0_38], %31 {strides = array<i32>} : memref<2x3x18x16xf32, #tpu.memory_space<vmem>>, vector<1x1x16x16xf32>,
      %c1_39 = arith.constant 1 : index
      %c0_40 = arith.constant 0 : index
      %c1_41 = arith.constant 1 : index
      %32 = vector.load %arg2[%c1_39, %c0_40, %c1_41] : memref<2x16x16xf32, #tpu.memory_space<vmem>>, vector<1x16x15xf32>
      %33 = vector.shape_cast %32 : vector<1x16x15xf32> to vector<16x15xf32>
      %c1_42 = arith.constant 1 : index
      %c2_43 = arith.constant 2 : index
      %c1_44 = arith.constant 1 : index
      %c0_45 = arith.constant 0 : index
      %34 = vector.load %arg6[%c1_42, %c2_43, %c1_44, %c0_45] : memref<2x3x18x16xf32, #tpu.memory_space<vmem>>, vector<1x1x16x15xf32>
      %35 = vector.shape_cast %34 : vector<1x1x16x15xf32> to vector<16x15xf32>
      %36 = vector.shape_cast %33 : vector<16x15xf32> to vector<1x1x16x15xf32>
      tpu.vector_store %arg6[%c1_42, %c2_43, %c1_44, %c0_45], %36 {strides = array<i32>} : memref<2x3x18x16xf32, #tpu.memory_space<vmem>>, vector<1x1x16x15xf32>,
    } else {
    }
    %c4_i32 = arith.constant 4 : i32
    %3 = arith.muli %arg1, %c4_i32 : i32
    %c0_i32_1 = arith.constant 0 : i32
    %c2_i32 = arith.constant 2 : i32
    %4 = arith.addi %c0_i32_1, %c2_i32 : i32
    %c1_i32 = arith.constant 1 : i32
    scf.for %arg7 = %c0_i32_1 to %4 step %c1_i32  : i32 {
      %c1_i32_3 = arith.constant 1 : i32
      %5 = arith.muli %arg7, %c1_i32_3 : i32
      %c0_i32_4 = arith.constant 0 : i32
      %6 = arith.addi %c0_i32_4, %5 : i32
      %c8_i32 = arith.constant 8 : i32
      %7 = arith.muli %6, %c8_i32 : i32
      %8 = tpu.assume_multiple %7, 8 : i32
      %c0_i32_5 = arith.constant 0 : i32
      %9 = arith.addi %8, %c0_i32_5 : i32
      %c0 = arith.constant 0 : index
      %c0_6 = arith.constant 0 : index
      %10 = arith.index_cast %9 : i32 to index
      %c0_7 = arith.constant 0 : index
      %11 = vector.load %arg6[%c0, %c0_6, %10, %c0_7] : memref<2x3x18x16xf32, #tpu.memory_space<vmem>>, vector<1x1x8x16xf32>
      %12 = vector.shape_cast %11 : vector<1x1x8x16xf32> to vector<8x16xf32>
      %c0_i32_8 = arith.constant 0 : i32
      %13 = arith.addi %8, %c0_i32_8 : i32
      %c0_9 = arith.constant 0 : index
      %c1 = arith.constant 1 : index
      %14 = arith.index_cast %13 : i32 to index
      %c0_10 = arith.constant 0 : index
      %15 = vector.load %arg6[%c0_9, %c1, %14, %c0_10] : memref<2x3x18x16xf32, #tpu.memory_space<vmem>>, vector<1x1x8x16xf32>
      %16 = vector.shape_cast %15 : vector<1x1x8x16xf32> to vector<8x16xf32>
      %c0_i32_11 = arith.constant 0 : i32
      %17 = arith.addi %8, %c0_i32_11 : i32
      %c0_12 = arith.constant 0 : index
      %c2 = arith.constant 2 : index
      %18 = arith.index_cast %17 : i32 to index
      %c0_13 = arith.constant 0 : index
      %19 = vector.load %arg6[%c0_12, %c2, %18, %c0_13] : memref<2x3x18x16xf32, #tpu.memory_space<vmem>>, vector<1x1x8x16xf32>
      %20 = vector.shape_cast %19 : vector<1x1x8x16xf32> to vector<8x16xf32>
      %c1_i32_14 = arith.constant 1 : i32
      %21 = arith.addi %8, %c1_i32_14 : i32
      %c0_15 = arith.constant 0 : index
      %c0_16 = arith.constant 0 : index
      %22 = arith.index_cast %21 : i32 to index
      %c0_17 = arith.constant 0 : index
      %23 = vector.load %arg6[%c0_15, %c0_16, %22, %c0_17] : memref<2x3x18x16xf32, #tpu.memory_space<vmem>>, vector<1x1x8x16xf32>
      %24 = vector.shape_cast %23 : vector<1x1x8x16xf32> to vector<8x16xf32>
      %c1_i32_18 = arith.constant 1 : i32
      %25 = arith.addi %8, %c1_i32_18 : i32
      %c0_19 = arith.constant 0 : index
      %c1_20 = arith.constant 1 : index
      %26 = arith.index_cast %25 : i32 to index
      %c0_21 = arith.constant 0 : index
      %27 = vector.load %arg6[%c0_19, %c1_20, %26, %c0_21] : memref<2x3x18x16xf32, #tpu.memory_space<vmem>>, vector<1x1x8x16xf32>
      %28 = vector.shape_cast %27 : vector<1x1x8x16xf32> to vector<8x16xf32>
      %c1_i32_22 = arith.constant 1 : i32
      %29 = arith.addi %8, %c1_i32_22 : i32
      %c0_23 = arith.constant 0 : index
      %c2_24 = arith.constant 2 : index
      %30 = arith.index_cast %29 : i32 to index
      %c0_25 = arith.constant 0 : index
      %31 = vector.load %arg6[%c0_23, %c2_24, %30, %c0_25] : memref<2x3x18x16xf32, #tpu.memory_space<vmem>>, vector<1x1x8x16xf32>
      %32 = vector.shape_cast %31 : vector<1x1x8x16xf32> to vector<8x16xf32>
      %c2_i32_26 = arith.constant 2 : i32
      %33 = arith.addi %8, %c2_i32_26 : i32
      %c0_27 = arith.constant 0 : index
      %c0_28 = arith.constant 0 : index
      %34 = arith.index_cast %33 : i32 to index
      %c0_29 = arith.constant 0 : index
      %35 = vector.load %arg6[%c0_27, %c0_28, %34, %c0_29] : memref<2x3x18x16xf32, #tpu.memory_space<vmem>>, vector<1x1x8x16xf32>
      %36 = vector.shape_cast %35 : vector<1x1x8x16xf32> to vector<8x16xf32>
      %c2_i32_30 = arith.constant 2 : i32
      %37 = arith.addi %8, %c2_i32_30 : i32
      %c0_31 = arith.constant 0 : index
      %c1_32 = arith.constant 1 : index
      %38 = arith.index_cast %37 : i32 to index
      %c0_33 = arith.constant 0 : index
      %39 = vector.load %arg6[%c0_31, %c1_32, %38, %c0_33] : memref<2x3x18x16xf32, #tpu.memory_space<vmem>>, vector<1x1x8x16xf32>
      %40 = vector.shape_cast %39 : vector<1x1x8x16xf32> to vector<8x16xf32>
      %c2_i32_34 = arith.constant 2 : i32
      %41 = arith.addi %8, %c2_i32_34 : i32
      %c0_35 = arith.constant 0 : index
      %c2_36 = arith.constant 2 : index
      %42 = arith.index_cast %41 : i32 to index
      %c0_37 = arith.constant 0 : index
      %43 = vector.load %arg6[%c0_35, %c2_36, %42, %c0_37] : memref<2x3x18x16xf32, #tpu.memory_space<vmem>>, vector<1x1x8x16xf32>
      %44 = vector.shape_cast %43 : vector<1x1x8x16xf32> to vector<8x16xf32>
      %c0_i32_38 = arith.constant 0 : i32
      %45 = arith.addi %3, %c0_i32_38 : i32
      %c9_i32 = arith.constant 9 : i32
      %46 = arith.muli %45, %c9_i32 : i32
      %47 = arith.index_cast %46 : i32 to index
      %48 = memref.load %arg3[%47] : memref<36xf32, #tpu.memory_space<smem>>
      %49 = vector.broadcast %48 : f32 to vector<8x16xf32>
      %50 = arith.mulf %12, %49 : vector<8x16xf32>
      %51 = arith.index_cast %45 : i32 to index
      %52 = memref.load %arg4[%51] : memref<4xf32, #tpu.memory_space<smem>>
      %53 = vector.broadcast %52 : f32 to vector<8x16xf32>
      %54 = arith.addf %50, %53 : vector<8x16xf32>
      %c9_i32_39 = arith.constant 9 : i32
      %55 = arith.muli %45, %c9_i32_39 : i32
      %c1_i32_40 = arith.constant 1 : i32
      %56 = arith.addi %55, %c1_i32_40 : i32
      %57 = arith.index_cast %56 : i32 to index
      %58 = memref.load %arg3[%57] : memref<36xf32, #tpu.memory_space<smem>>
      %59 = vector.broadcast %58 : f32 to vector<8x16xf32>
      %60 = arith.mulf %59, %16 : vector<8x16xf32>
      %61 = arith.addf %54, %60 : vector<8x16xf32>
      %c9_i32_41 = arith.constant 9 : i32
      %62 = arith.muli %45, %c9_i32_41 : i32
      %c2_i32_42 = arith.constant 2 : i32
      %63 = arith.addi %62, %c2_i32_42 : i32
      %64 = arith.index_cast %63 : i32 to index
      %65 = memref.load %arg3[%64] : memref<36xf32, #tpu.memory_space<smem>>
      %66 = vector.broadcast %65 : f32 to vector<8x16xf32>
      %67 = arith.mulf %66, %20 : vector<8x16xf32>
      %68 = arith.addf %61, %67 : vector<8x16xf32>
      %c9_i32_43 = arith.constant 9 : i32
      %69 = arith.muli %45, %c9_i32_43 : i32
      %c3_i32 = arith.constant 3 : i32
      %70 = arith.addi %69, %c3_i32 : i32
      %71 = arith.index_cast %70 : i32 to index
      %72 = memref.load %arg3[%71] : memref<36xf32, #tpu.memory_space<smem>>
      %73 = vector.broadcast %72 : f32 to vector<8x16xf32>
      %74 = arith.mulf %73, %24 : vector<8x16xf32>
      %75 = arith.addf %68, %74 : vector<8x16xf32>
      %c9_i32_44 = arith.constant 9 : i32
      %76 = arith.muli %45, %c9_i32_44 : i32
      %c4_i32_45 = arith.constant 4 : i32
      %77 = arith.addi %76, %c4_i32_45 : i32
      %78 = arith.index_cast %77 : i32 to index
      %79 = memref.load %arg3[%78] : memref<36xf32, #tpu.memory_space<smem>>
      %80 = vector.broadcast %79 : f32 to vector<8x16xf32>
      %81 = arith.mulf %80, %28 : vector<8x16xf32>
      %82 = arith.addf %75, %81 : vector<8x16xf32>
      %c9_i32_46 = arith.constant 9 : i32
      %83 = arith.muli %45, %c9_i32_46 : i32
      %c5_i32 = arith.constant 5 : i32
      %84 = arith.addi %83, %c5_i32 : i32
      %85 = arith.index_cast %84 : i32 to index
      %86 = memref.load %arg3[%85] : memref<36xf32, #tpu.memory_space<smem>>
      %87 = vector.broadcast %86 : f32 to vector<8x16xf32>
      %88 = arith.mulf %87, %32 : vector<8x16xf32>
      %89 = arith.addf %82, %88 : vector<8x16xf32>
      %c9_i32_47 = arith.constant 9 : i32
      %90 = arith.muli %45, %c9_i32_47 : i32
      %c6_i32 = arith.constant 6 : i32
      %91 = arith.addi %90, %c6_i32 : i32
      %92 = arith.index_cast %91 : i32 to index
      %93 = memref.load %arg3[%92] : memref<36xf32, #tpu.memory_space<smem>>
      %94 = vector.broadcast %93 : f32 to vector<8x16xf32>
      %95 = arith.mulf %94, %36 : vector<8x16xf32>
      %96 = arith.addf %89, %95 : vector<8x16xf32>
      %c9_i32_48 = arith.constant 9 : i32
      %97 = arith.muli %45, %c9_i32_48 : i32
      %c7_i32 = arith.constant 7 : i32
      %98 = arith.addi %97, %c7_i32 : i32
      %99 = arith.index_cast %98 : i32 to index
      %100 = memref.load %arg3[%99] : memref<36xf32, #tpu.memory_space<smem>>
      %101 = vector.broadcast %100 : f32 to vector<8x16xf32>
      %102 = arith.mulf %101, %40 : vector<8x16xf32>
      %103 = arith.addf %96, %102 : vector<8x16xf32>
      %c9_i32_49 = arith.constant 9 : i32
      %104 = arith.muli %45, %c9_i32_49 : i32
      %c8_i32_50 = arith.constant 8 : i32
      %105 = arith.addi %104, %c8_i32_50 : i32
      %106 = arith.index_cast %105 : i32 to index
      %107 = memref.load %arg3[%106] : memref<36xf32, #tpu.memory_space<smem>>
      %108 = vector.broadcast %107 : f32 to vector<8x16xf32>
      %109 = arith.mulf %108, %44 : vector<8x16xf32>
      %110 = arith.addf %103, %109 : vector<8x16xf32>
      %c0_51 = arith.constant 0 : index
      %c0_52 = arith.constant 0 : index
      %111 = arith.index_cast %8 : i32 to index
      %c0_53 = arith.constant 0 : index
      %112 = vector.load %arg5[%c0_51, %c0_52, %111, %c0_53] : memref<2x4x16x16xf32, #tpu.memory_space<vmem>>, vector<1x1x8x16xf32>
      %113 = vector.shape_cast %112 : vector<1x1x8x16xf32> to vector<8x16xf32>
      %114 = vector.shape_cast %110 : vector<8x16xf32> to vector<1x1x8x16xf32>
      tpu.vector_store %arg5[%c0_51, %c0_52, %111, %c0_53], %114 {strides = array<i32>} : memref<2x4x16x16xf32, #tpu.memory_space<vmem>>, vector<1x1x8x16xf32>,
      %c1_i32_54 = arith.constant 1 : i32
      %115 = arith.addi %3, %c1_i32_54 : i32
      %c9_i32_55 = arith.constant 9 : i32
      %116 = arith.muli %115, %c9_i32_55 : i32
      %117 = arith.index_cast %116 : i32 to index
      %118 = memref.load %arg3[%117] : memref<36xf32, #tpu.memory_space<smem>>
      %119 = vector.broadcast %118 : f32 to vector<8x16xf32>
      %120 = arith.mulf %12, %119 : vector<8x16xf32>
      %121 = arith.index_cast %115 : i32 to index
      %122 = memref.load %arg4[%121] : memref<4xf32, #tpu.memory_space<smem>>
      %123 = vector.broadcast %122 : f32 to vector<8x16xf32>
      %124 = arith.addf %120, %123 : vector<8x16xf32>
      %c9_i32_56 = arith.constant 9 : i32
      %125 = arith.muli %115, %c9_i32_56 : i32
      %c1_i32_57 = arith.constant 1 : i32
      %126 = arith.addi %125, %c1_i32_57 : i32
      %127 = arith.index_cast %126 : i32 to index
      %128 = memref.load %arg3[%127] : memref<36xf32, #tpu.memory_space<smem>>
      %129 = vector.broadcast %128 : f32 to vector<8x16xf32>
      %130 = arith.mulf %129, %16 : vector<8x16xf32>
      %131 = arith.addf %124, %130 : vector<8x16xf32>
      %c9_i32_58 = arith.constant 9 : i32
      %132 = arith.muli %115, %c9_i32_58 : i32
      %c2_i32_59 = arith.constant 2 : i32
      %133 = arith.addi %132, %c2_i32_59 : i32
      %134 = arith.index_cast %133 : i32 to index
      %135 = memref.load %arg3[%134] : memref<36xf32, #tpu.memory_space<smem>>
      %136 = vector.broadcast %135 : f32 to vector<8x16xf32>
      %137 = arith.mulf %136, %20 : vector<8x16xf32>
      %138 = arith.addf %131, %137 : vector<8x16xf32>
      %c9_i32_60 = arith.constant 9 : i32
      %139 = arith.muli %115, %c9_i32_60 : i32
      %c3_i32_61 = arith.constant 3 : i32
      %140 = arith.addi %139, %c3_i32_61 : i32
      %141 = arith.index_cast %140 : i32 to index
      %142 = memref.load %arg3[%141] : memref<36xf32, #tpu.memory_space<smem>>
      %143 = vector.broadcast %142 : f32 to vector<8x16xf32>
      %144 = arith.mulf %143, %24 : vector<8x16xf32>
      %145 = arith.addf %138, %144 : vector<8x16xf32>
      %c9_i32_62 = arith.constant 9 : i32
      %146 = arith.muli %115, %c9_i32_62 : i32
      %c4_i32_63 = arith.constant 4 : i32
      %147 = arith.addi %146, %c4_i32_63 : i32
      %148 = arith.index_cast %147 : i32 to index
      %149 = memref.load %arg3[%148] : memref<36xf32, #tpu.memory_space<smem>>
      %150 = vector.broadcast %149 : f32 to vector<8x16xf32>
      %151 = arith.mulf %150, %28 : vector<8x16xf32>
      %152 = arith.addf %145, %151 : vector<8x16xf32>
      %c9_i32_64 = arith.constant 9 : i32
      %153 = arith.muli %115, %c9_i32_64 : i32
      %c5_i32_65 = arith.constant 5 : i32
      %154 = arith.addi %153, %c5_i32_65 : i32
      %155 = arith.index_cast %154 : i32 to index
      %156 = memref.load %arg3[%155] : memref<36xf32, #tpu.memory_space<smem>>
      %157 = vector.broadcast %156 : f32 to vector<8x16xf32>
      %158 = arith.mulf %157, %32 : vector<8x16xf32>
      %159 = arith.addf %152, %158 : vector<8x16xf32>
      %c9_i32_66 = arith.constant 9 : i32
      %160 = arith.muli %115, %c9_i32_66 : i32
      %c6_i32_67 = arith.constant 6 : i32
      %161 = arith.addi %160, %c6_i32_67 : i32
      %162 = arith.index_cast %161 : i32 to index
      %163 = memref.load %arg3[%162] : memref<36xf32, #tpu.memory_space<smem>>
      %164 = vector.broadcast %163 : f32 to vector<8x16xf32>
      %165 = arith.mulf %164, %36 : vector<8x16xf32>
      %166 = arith.addf %159, %165 : vector<8x16xf32>
      %c9_i32_68 = arith.constant 9 : i32
      %167 = arith.muli %115, %c9_i32_68 : i32
      %c7_i32_69 = arith.constant 7 : i32
      %168 = arith.addi %167, %c7_i32_69 : i32
      %169 = arith.index_cast %168 : i32 to index
      %170 = memref.load %arg3[%169] : memref<36xf32, #tpu.memory_space<smem>>
      %171 = vector.broadcast %170 : f32 to vector<8x16xf32>
      %172 = arith.mulf %171, %40 : vector<8x16xf32>
      %173 = arith.addf %166, %172 : vector<8x16xf32>
      %c9_i32_70 = arith.constant 9 : i32
      %174 = arith.muli %115, %c9_i32_70 : i32
      %c8_i32_71 = arith.constant 8 : i32
      %175 = arith.addi %174, %c8_i32_71 : i32
      %176 = arith.index_cast %175 : i32 to index
      %177 = memref.load %arg3[%176] : memref<36xf32, #tpu.memory_space<smem>>
      %178 = vector.broadcast %177 : f32 to vector<8x16xf32>
      %179 = arith.mulf %178, %44 : vector<8x16xf32>
      %180 = arith.addf %173, %179 : vector<8x16xf32>
      %c0_72 = arith.constant 0 : index
      %c1_73 = arith.constant 1 : index
      %181 = arith.index_cast %8 : i32 to index
      %c0_74 = arith.constant 0 : index
      %182 = vector.load %arg5[%c0_72, %c1_73, %181, %c0_74] : memref<2x4x16x16xf32, #tpu.memory_space<vmem>>, vector<1x1x8x16xf32>
      %183 = vector.shape_cast %182 : vector<1x1x8x16xf32> to vector<8x16xf32>
      %184 = vector.shape_cast %180 : vector<8x16xf32> to vector<1x1x8x16xf32>
      tpu.vector_store %arg5[%c0_72, %c1_73, %181, %c0_74], %184 {strides = array<i32>} : memref<2x4x16x16xf32, #tpu.memory_space<vmem>>, vector<1x1x8x16xf32>,
      %c2_i32_75 = arith.constant 2 : i32
      %185 = arith.addi %3, %c2_i32_75 : i32
      %c9_i32_76 = arith.constant 9 : i32
      %186 = arith.muli %185, %c9_i32_76 : i32
      %187 = arith.index_cast %186 : i32 to index
      %188 = memref.load %arg3[%187] : memref<36xf32, #tpu.memory_space<smem>>
      %189 = vector.broadcast %188 : f32 to vector<8x16xf32>
      %190 = arith.mulf %12, %189 : vector<8x16xf32>
      %191 = arith.index_cast %185 : i32 to index
      %192 = memref.load %arg4[%191] : memref<4xf32, #tpu.memory_space<smem>>
      %193 = vector.broadcast %192 : f32 to vector<8x16xf32>
      %194 = arith.addf %190, %193 : vector<8x16xf32>
      %c9_i32_77 = arith.constant 9 : i32
      %195 = arith.muli %185, %c9_i32_77 : i32
      %c1_i32_78 = arith.constant 1 : i32
      %196 = arith.addi %195, %c1_i32_78 : i32
      %197 = arith.index_cast %196 : i32 to index
      %198 = memref.load %arg3[%197] : memref<36xf32, #tpu.memory_space<smem>>
      %199 = vector.broadcast %198 : f32 to vector<8x16xf32>
      %200 = arith.mulf %199, %16 : vector<8x16xf32>
      %201 = arith.addf %194, %200 : vector<8x16xf32>
      %c9_i32_79 = arith.constant 9 : i32
      %202 = arith.muli %185, %c9_i32_79 : i32
      %c2_i32_80 = arith.constant 2 : i32
      %203 = arith.addi %202, %c2_i32_80 : i32
      %204 = arith.index_cast %203 : i32 to index
      %205 = memref.load %arg3[%204] : memref<36xf32, #tpu.memory_space<smem>>
      %206 = vector.broadcast %205 : f32 to vector<8x16xf32>
      %207 = arith.mulf %206, %20 : vector<8x16xf32>
      %208 = arith.addf %201, %207 : vector<8x16xf32>
      %c9_i32_81 = arith.constant 9 : i32
      %209 = arith.muli %185, %c9_i32_81 : i32
      %c3_i32_82 = arith.constant 3 : i32
      %210 = arith.addi %209, %c3_i32_82 : i32
      %211 = arith.index_cast %210 : i32 to index
      %212 = memref.load %arg3[%211] : memref<36xf32, #tpu.memory_space<smem>>
      %213 = vector.broadcast %212 : f32 to vector<8x16xf32>
      %214 = arith.mulf %213, %24 : vector<8x16xf32>
      %215 = arith.addf %208, %214 : vector<8x16xf32>
      %c9_i32_83 = arith.constant 9 : i32
      %216 = arith.muli %185, %c9_i32_83 : i32
      %c4_i32_84 = arith.constant 4 : i32
      %217 = arith.addi %216, %c4_i32_84 : i32
      %218 = arith.index_cast %217 : i32 to index
      %219 = memref.load %arg3[%218] : memref<36xf32, #tpu.memory_space<smem>>
      %220 = vector.broadcast %219 : f32 to vector<8x16xf32>
      %221 = arith.mulf %220, %28 : vector<8x16xf32>
      %222 = arith.addf %215, %221 : vector<8x16xf32>
      %c9_i32_85 = arith.constant 9 : i32
      %223 = arith.muli %185, %c9_i32_85 : i32
      %c5_i32_86 = arith.constant 5 : i32
      %224 = arith.addi %223, %c5_i32_86 : i32
      %225 = arith.index_cast %224 : i32 to index
      %226 = memref.load %arg3[%225] : memref<36xf32, #tpu.memory_space<smem>>
      %227 = vector.broadcast %226 : f32 to vector<8x16xf32>
      %228 = arith.mulf %227, %32 : vector<8x16xf32>
      %229 = arith.addf %222, %228 : vector<8x16xf32>
      %c9_i32_87 = arith.constant 9 : i32
      %230 = arith.muli %185, %c9_i32_87 : i32
      %c6_i32_88 = arith.constant 6 : i32
      %231 = arith.addi %230, %c6_i32_88 : i32
      %232 = arith.index_cast %231 : i32 to index
      %233 = memref.load %arg3[%232] : memref<36xf32, #tpu.memory_space<smem>>
      %234 = vector.broadcast %233 : f32 to vector<8x16xf32>
      %235 = arith.mulf %234, %36 : vector<8x16xf32>
      %236 = arith.addf %229, %235 : vector<8x16xf32>
      %c9_i32_89 = arith.constant 9 : i32
      %237 = arith.muli %185, %c9_i32_89 : i32
      %c7_i32_90 = arith.constant 7 : i32
      %238 = arith.addi %237, %c7_i32_90 : i32
      %239 = arith.index_cast %238 : i32 to index
      %240 = memref.load %arg3[%239] : memref<36xf32, #tpu.memory_space<smem>>
      %241 = vector.broadcast %240 : f32 to vector<8x16xf32>
      %242 = arith.mulf %241, %40 : vector<8x16xf32>
      %243 = arith.addf %236, %242 : vector<8x16xf32>
      %c9_i32_91 = arith.constant 9 : i32
      %244 = arith.muli %185, %c9_i32_91 : i32
      %c8_i32_92 = arith.constant 8 : i32
      %245 = arith.addi %244, %c8_i32_92 : i32
      %246 = arith.index_cast %245 : i32 to index
      %247 = memref.load %arg3[%246] : memref<36xf32, #tpu.memory_space<smem>>
      %248 = vector.broadcast %247 : f32 to vector<8x16xf32>
      %249 = arith.mulf %248, %44 : vector<8x16xf32>
      %250 = arith.addf %243, %249 : vector<8x16xf32>
      %c0_93 = arith.constant 0 : index
      %c2_94 = arith.constant 2 : index
      %251 = arith.index_cast %8 : i32 to index
      %c0_95 = arith.constant 0 : index
      %252 = vector.load %arg5[%c0_93, %c2_94, %251, %c0_95] : memref<2x4x16x16xf32, #tpu.memory_space<vmem>>, vector<1x1x8x16xf32>
      %253 = vector.shape_cast %252 : vector<1x1x8x16xf32> to vector<8x16xf32>
      %254 = vector.shape_cast %250 : vector<8x16xf32> to vector<1x1x8x16xf32>
      tpu.vector_store %arg5[%c0_93, %c2_94, %251, %c0_95], %254 {strides = array<i32>} : memref<2x4x16x16xf32, #tpu.memory_space<vmem>>, vector<1x1x8x16xf32>,
      %c3_i32_96 = arith.constant 3 : i32
      %255 = arith.addi %3, %c3_i32_96 : i32
      %c9_i32_97 = arith.constant 9 : i32
      %256 = arith.muli %255, %c9_i32_97 : i32
      %257 = arith.index_cast %256 : i32 to index
      %258 = memref.load %arg3[%257] : memref<36xf32, #tpu.memory_space<smem>>
      %259 = vector.broadcast %258 : f32 to vector<8x16xf32>
      %260 = arith.mulf %12, %259 : vector<8x16xf32>
      %261 = arith.index_cast %255 : i32 to index
      %262 = memref.load %arg4[%261] : memref<4xf32, #tpu.memory_space<smem>>
      %263 = vector.broadcast %262 : f32 to vector<8x16xf32>
      %264 = arith.addf %260, %263 : vector<8x16xf32>
      %c9_i32_98 = arith.constant 9 : i32
      %265 = arith.muli %255, %c9_i32_98 : i32
      %c1_i32_99 = arith.constant 1 : i32
      %266 = arith.addi %265, %c1_i32_99 : i32
      %267 = arith.index_cast %266 : i32 to index
      %268 = memref.load %arg3[%267] : memref<36xf32, #tpu.memory_space<smem>>
      %269 = vector.broadcast %268 : f32 to vector<8x16xf32>
      %270 = arith.mulf %269, %16 : vector<8x16xf32>
      %271 = arith.addf %264, %270 : vector<8x16xf32>
      %c9_i32_100 = arith.constant 9 : i32
      %272 = arith.muli %255, %c9_i32_100 : i32
      %c2_i32_101 = arith.constant 2 : i32
      %273 = arith.addi %272, %c2_i32_101 : i32
      %274 = arith.index_cast %273 : i32 to index
      %275 = memref.load %arg3[%274] : memref<36xf32, #tpu.memory_space<smem>>
      %276 = vector.broadcast %275 : f32 to vector<8x16xf32>
      %277 = arith.mulf %276, %20 : vector<8x16xf32>
      %278 = arith.addf %271, %277 : vector<8x16xf32>
      %c9_i32_102 = arith.constant 9 : i32
      %279 = arith.muli %255, %c9_i32_102 : i32
      %c3_i32_103 = arith.constant 3 : i32
      %280 = arith.addi %279, %c3_i32_103 : i32
      %281 = arith.index_cast %280 : i32 to index
      %282 = memref.load %arg3[%281] : memref<36xf32, #tpu.memory_space<smem>>
      %283 = vector.broadcast %282 : f32 to vector<8x16xf32>
      %284 = arith.mulf %283, %24 : vector<8x16xf32>
      %285 = arith.addf %278, %284 : vector<8x16xf32>
      %c9_i32_104 = arith.constant 9 : i32
      %286 = arith.muli %255, %c9_i32_104 : i32
      %c4_i32_105 = arith.constant 4 : i32
      %287 = arith.addi %286, %c4_i32_105 : i32
      %288 = arith.index_cast %287 : i32 to index
      %289 = memref.load %arg3[%288] : memref<36xf32, #tpu.memory_space<smem>>
      %290 = vector.broadcast %289 : f32 to vector<8x16xf32>
      %291 = arith.mulf %290, %28 : vector<8x16xf32>
      %292 = arith.addf %285, %291 : vector<8x16xf32>
      %c9_i32_106 = arith.constant 9 : i32
      %293 = arith.muli %255, %c9_i32_106 : i32
      %c5_i32_107 = arith.constant 5 : i32
      %294 = arith.addi %293, %c5_i32_107 : i32
      %295 = arith.index_cast %294 : i32 to index
      %296 = memref.load %arg3[%295] : memref<36xf32, #tpu.memory_space<smem>>
      %297 = vector.broadcast %296 : f32 to vector<8x16xf32>
      %298 = arith.mulf %297, %32 : vector<8x16xf32>
      %299 = arith.addf %292, %298 : vector<8x16xf32>
      %c9_i32_108 = arith.constant 9 : i32
      %300 = arith.muli %255, %c9_i32_108 : i32
      %c6_i32_109 = arith.constant 6 : i32
      %301 = arith.addi %300, %c6_i32_109 : i32
      %302 = arith.index_cast %301 : i32 to index
      %303 = memref.load %arg3[%302] : memref<36xf32, #tpu.memory_space<smem>>
      %304 = vector.broadcast %303 : f32 to vector<8x16xf32>
      %305 = arith.mulf %304, %36 : vector<8x16xf32>
      %306 = arith.addf %299, %305 : vector<8x16xf32>
      %c9_i32_110 = arith.constant 9 : i32
      %307 = arith.muli %255, %c9_i32_110 : i32
      %c7_i32_111 = arith.constant 7 : i32
      %308 = arith.addi %307, %c7_i32_111 : i32
      %309 = arith.index_cast %308 : i32 to index
      %310 = memref.load %arg3[%309] : memref<36xf32, #tpu.memory_space<smem>>
      %311 = vector.broadcast %310 : f32 to vector<8x16xf32>
      %312 = arith.mulf %311, %40 : vector<8x16xf32>
      %313 = arith.addf %306, %312 : vector<8x16xf32>
      %c9_i32_112 = arith.constant 9 : i32
      %314 = arith.muli %255, %c9_i32_112 : i32
      %c8_i32_113 = arith.constant 8 : i32
      %315 = arith.addi %314, %c8_i32_113 : i32
      %316 = arith.index_cast %315 : i32 to index
      %317 = memref.load %arg3[%316] : memref<36xf32, #tpu.memory_space<smem>>
      %318 = vector.broadcast %317 : f32 to vector<8x16xf32>
      %319 = arith.mulf %318, %44 : vector<8x16xf32>
      %320 = arith.addf %313, %319 : vector<8x16xf32>
      %c0_114 = arith.constant 0 : index
      %c3 = arith.constant 3 : index
      %321 = arith.index_cast %8 : i32 to index
      %c0_115 = arith.constant 0 : index
      %322 = vector.load %arg5[%c0_114, %c3, %321, %c0_115] : memref<2x4x16x16xf32, #tpu.memory_space<vmem>>, vector<1x1x8x16xf32>
      %323 = vector.shape_cast %322 : vector<1x1x8x16xf32> to vector<8x16xf32>
      %324 = vector.shape_cast %320 : vector<8x16xf32> to vector<1x1x8x16xf32>
      tpu.vector_store %arg5[%c0_114, %c3, %321, %c0_115], %324 {strides = array<i32>} : memref<2x4x16x16xf32, #tpu.memory_space<vmem>>, vector<1x1x8x16xf32>,
      %c0_i32_116 = arith.constant 0 : i32
      %325 = arith.addi %8, %c0_i32_116 : i32
      %c1_117 = arith.constant 1 : index
      %c0_118 = arith.constant 0 : index
      %326 = arith.index_cast %325 : i32 to index
      %c0_119 = arith.constant 0 : index
      %327 = vector.load %arg6[%c1_117, %c0_118, %326, %c0_119] : memref<2x3x18x16xf32, #tpu.memory_space<vmem>>, vector<1x1x8x16xf32>
      %328 = vector.shape_cast %327 : vector<1x1x8x16xf32> to vector<8x16xf32>
      %c0_i32_120 = arith.constant 0 : i32
      %329 = arith.addi %8, %c0_i32_120 : i32
      %c1_121 = arith.constant 1 : index
      %c1_122 = arith.constant 1 : index
      %330 = arith.index_cast %329 : i32 to index
      %c0_123 = arith.constant 0 : index
      %331 = vector.load %arg6[%c1_121, %c1_122, %330, %c0_123] : memref<2x3x18x16xf32, #tpu.memory_space<vmem>>, vector<1x1x8x16xf32>
      %332 = vector.shape_cast %331 : vector<1x1x8x16xf32> to vector<8x16xf32>
      %c0_i32_124 = arith.constant 0 : i32
      %333 = arith.addi %8, %c0_i32_124 : i32
      %c1_125 = arith.constant 1 : index
      %c2_126 = arith.constant 2 : index
      %334 = arith.index_cast %333 : i32 to index
      %c0_127 = arith.constant 0 : index
      %335 = vector.load %arg6[%c1_125, %c2_126, %334, %c0_127] : memref<2x3x18x16xf32, #tpu.memory_space<vmem>>, vector<1x1x8x16xf32>
      %336 = vector.shape_cast %335 : vector<1x1x8x16xf32> to vector<8x16xf32>
      %c1_i32_128 = arith.constant 1 : i32
      %337 = arith.addi %8, %c1_i32_128 : i32
      %c1_129 = arith.constant 1 : index
      %c0_130 = arith.constant 0 : index
      %338 = arith.index_cast %337 : i32 to index
      %c0_131 = arith.constant 0 : index
      %339 = vector.load %arg6[%c1_129, %c0_130, %338, %c0_131] : memref<2x3x18x16xf32, #tpu.memory_space<vmem>>, vector<1x1x8x16xf32>
      %340 = vector.shape_cast %339 : vector<1x1x8x16xf32> to vector<8x16xf32>
      %c1_i32_132 = arith.constant 1 : i32
      %341 = arith.addi %8, %c1_i32_132 : i32
      %c1_133 = arith.constant 1 : index
      %c1_134 = arith.constant 1 : index
      %342 = arith.index_cast %341 : i32 to index
      %c0_135 = arith.constant 0 : index
      %343 = vector.load %arg6[%c1_133, %c1_134, %342, %c0_135] : memref<2x3x18x16xf32, #tpu.memory_space<vmem>>, vector<1x1x8x16xf32>
      %344 = vector.shape_cast %343 : vector<1x1x8x16xf32> to vector<8x16xf32>
      %c1_i32_136 = arith.constant 1 : i32
      %345 = arith.addi %8, %c1_i32_136 : i32
      %c1_137 = arith.constant 1 : index
      %c2_138 = arith.constant 2 : index
      %346 = arith.index_cast %345 : i32 to index
      %c0_139 = arith.constant 0 : index
      %347 = vector.load %arg6[%c1_137, %c2_138, %346, %c0_139] : memref<2x3x18x16xf32, #tpu.memory_space<vmem>>, vector<1x1x8x16xf32>
      %348 = vector.shape_cast %347 : vector<1x1x8x16xf32> to vector<8x16xf32>
      %c2_i32_140 = arith.constant 2 : i32
      %349 = arith.addi %8, %c2_i32_140 : i32
      %c1_141 = arith.constant 1 : index
      %c0_142 = arith.constant 0 : index
      %350 = arith.index_cast %349 : i32 to index
      %c0_143 = arith.constant 0 : index
      %351 = vector.load %arg6[%c1_141, %c0_142, %350, %c0_143] : memref<2x3x18x16xf32, #tpu.memory_space<vmem>>, vector<1x1x8x16xf32>
      %352 = vector.shape_cast %351 : vector<1x1x8x16xf32> to vector<8x16xf32>
      %c2_i32_144 = arith.constant 2 : i32
      %353 = arith.addi %8, %c2_i32_144 : i32
      %c1_145 = arith.constant 1 : index
      %c1_146 = arith.constant 1 : index
      %354 = arith.index_cast %353 : i32 to index
      %c0_147 = arith.constant 0 : index
      %355 = vector.load %arg6[%c1_145, %c1_146, %354, %c0_147] : memref<2x3x18x16xf32, #tpu.memory_space<vmem>>, vector<1x1x8x16xf32>
      %356 = vector.shape_cast %355 : vector<1x1x8x16xf32> to vector<8x16xf32>
      %c2_i32_148 = arith.constant 2 : i32
      %357 = arith.addi %8, %c2_i32_148 : i32
      %c1_149 = arith.constant 1 : index
      %c2_150 = arith.constant 2 : index
      %358 = arith.index_cast %357 : i32 to index
      %c0_151 = arith.constant 0 : index
      %359 = vector.load %arg6[%c1_149, %c2_150, %358, %c0_151] : memref<2x3x18x16xf32, #tpu.memory_space<vmem>>, vector<1x1x8x16xf32>
      %360 = vector.shape_cast %359 : vector<1x1x8x16xf32> to vector<8x16xf32>
      %c0_i32_152 = arith.constant 0 : i32
      %361 = arith.addi %3, %c0_i32_152 : i32
      %c9_i32_153 = arith.constant 9 : i32
      %362 = arith.muli %361, %c9_i32_153 : i32
      %363 = arith.index_cast %362 : i32 to index
      %364 = memref.load %arg3[%363] : memref<36xf32, #tpu.memory_space<smem>>
      %365 = vector.broadcast %364 : f32 to vector<8x16xf32>
      %366 = arith.mulf %328, %365 : vector<8x16xf32>
      %367 = arith.index_cast %361 : i32 to index
      %368 = memref.load %arg4[%367] : memref<4xf32, #tpu.memory_space<smem>>
      %369 = vector.broadcast %368 : f32 to vector<8x16xf32>
      %370 = arith.addf %366, %369 : vector<8x16xf32>
      %c9_i32_154 = arith.constant 9 : i32
      %371 = arith.muli %361, %c9_i32_154 : i32
      %c1_i32_155 = arith.constant 1 : i32
      %372 = arith.addi %371, %c1_i32_155 : i32
      %373 = arith.index_cast %372 : i32 to index
      %374 = memref.load %arg3[%373] : memref<36xf32, #tpu.memory_space<smem>>
      %375 = vector.broadcast %374 : f32 to vector<8x16xf32>
      %376 = arith.mulf %375, %332 : vector<8x16xf32>
      %377 = arith.addf %370, %376 : vector<8x16xf32>
      %c9_i32_156 = arith.constant 9 : i32
      %378 = arith.muli %361, %c9_i32_156 : i32
      %c2_i32_157 = arith.constant 2 : i32
      %379 = arith.addi %378, %c2_i32_157 : i32
      %380 = arith.index_cast %379 : i32 to index
      %381 = memref.load %arg3[%380] : memref<36xf32, #tpu.memory_space<smem>>
      %382 = vector.broadcast %381 : f32 to vector<8x16xf32>
      %383 = arith.mulf %382, %336 : vector<8x16xf32>
      %384 = arith.addf %377, %383 : vector<8x16xf32>
      %c9_i32_158 = arith.constant 9 : i32
      %385 = arith.muli %361, %c9_i32_158 : i32
      %c3_i32_159 = arith.constant 3 : i32
      %386 = arith.addi %385, %c3_i32_159 : i32
      %387 = arith.index_cast %386 : i32 to index
      %388 = memref.load %arg3[%387] : memref<36xf32, #tpu.memory_space<smem>>
      %389 = vector.broadcast %388 : f32 to vector<8x16xf32>
      %390 = arith.mulf %389, %340 : vector<8x16xf32>
      %391 = arith.addf %384, %390 : vector<8x16xf32>
      %c9_i32_160 = arith.constant 9 : i32
      %392 = arith.muli %361, %c9_i32_160 : i32
      %c4_i32_161 = arith.constant 4 : i32
      %393 = arith.addi %392, %c4_i32_161 : i32
      %394 = arith.index_cast %393 : i32 to index
      %395 = memref.load %arg3[%394] : memref<36xf32, #tpu.memory_space<smem>>
      %396 = vector.broadcast %395 : f32 to vector<8x16xf32>
      %397 = arith.mulf %396, %344 : vector<8x16xf32>
      %398 = arith.addf %391, %397 : vector<8x16xf32>
      %c9_i32_162 = arith.constant 9 : i32
      %399 = arith.muli %361, %c9_i32_162 : i32
      %c5_i32_163 = arith.constant 5 : i32
      %400 = arith.addi %399, %c5_i32_163 : i32
      %401 = arith.index_cast %400 : i32 to index
      %402 = memref.load %arg3[%401] : memref<36xf32, #tpu.memory_space<smem>>
      %403 = vector.broadcast %402 : f32 to vector<8x16xf32>
      %404 = arith.mulf %403, %348 : vector<8x16xf32>
      %405 = arith.addf %398, %404 : vector<8x16xf32>
      %c9_i32_164 = arith.constant 9 : i32
      %406 = arith.muli %361, %c9_i32_164 : i32
      %c6_i32_165 = arith.constant 6 : i32
      %407 = arith.addi %406, %c6_i32_165 : i32
      %408 = arith.index_cast %407 : i32 to index
      %409 = memref.load %arg3[%408] : memref<36xf32, #tpu.memory_space<smem>>
      %410 = vector.broadcast %409 : f32 to vector<8x16xf32>
      %411 = arith.mulf %410, %352 : vector<8x16xf32>
      %412 = arith.addf %405, %411 : vector<8x16xf32>
      %c9_i32_166 = arith.constant 9 : i32
      %413 = arith.muli %361, %c9_i32_166 : i32
      %c7_i32_167 = arith.constant 7 : i32
      %414 = arith.addi %413, %c7_i32_167 : i32
      %415 = arith.index_cast %414 : i32 to index
      %416 = memref.load %arg3[%415] : memref<36xf32, #tpu.memory_space<smem>>
      %417 = vector.broadcast %416 : f32 to vector<8x16xf32>
      %418 = arith.mulf %417, %356 : vector<8x16xf32>
      %419 = arith.addf %412, %418 : vector<8x16xf32>
      %c9_i32_168 = arith.constant 9 : i32
      %420 = arith.muli %361, %c9_i32_168 : i32
      %c8_i32_169 = arith.constant 8 : i32
      %421 = arith.addi %420, %c8_i32_169 : i32
      %422 = arith.index_cast %421 : i32 to index
      %423 = memref.load %arg3[%422] : memref<36xf32, #tpu.memory_space<smem>>
      %424 = vector.broadcast %423 : f32 to vector<8x16xf32>
      %425 = arith.mulf %424, %360 : vector<8x16xf32>
      %426 = arith.addf %419, %425 : vector<8x16xf32>
      %c1_170 = arith.constant 1 : index
      %c0_171 = arith.constant 0 : index
      %427 = arith.index_cast %8 : i32 to index
      %c0_172 = arith.constant 0 : index
      %428 = vector.load %arg5[%c1_170, %c0_171, %427, %c0_172] : memref<2x4x16x16xf32, #tpu.memory_space<vmem>>, vector<1x1x8x16xf32>
      %429 = vector.shape_cast %428 : vector<1x1x8x16xf32> to vector<8x16xf32>
      %430 = vector.shape_cast %426 : vector<8x16xf32> to vector<1x1x8x16xf32>
      tpu.vector_store %arg5[%c1_170, %c0_171, %427, %c0_172], %430 {strides = array<i32>} : memref<2x4x16x16xf32, #tpu.memory_space<vmem>>, vector<1x1x8x16xf32>,
      %c1_i32_173 = arith.constant 1 : i32
      %431 = arith.addi %3, %c1_i32_173 : i32
      %c9_i32_174 = arith.constant 9 : i32
      %432 = arith.muli %431, %c9_i32_174 : i32
      %433 = arith.index_cast %432 : i32 to index
      %434 = memref.load %arg3[%433] : memref<36xf32, #tpu.memory_space<smem>>
      %435 = vector.broadcast %434 : f32 to vector<8x16xf32>
      %436 = arith.mulf %328, %435 : vector<8x16xf32>
      %437 = arith.index_cast %431 : i32 to index
      %438 = memref.load %arg4[%437] : memref<4xf32, #tpu.memory_space<smem>>
      %439 = vector.broadcast %438 : f32 to vector<8x16xf32>
      %440 = arith.addf %436, %439 : vector<8x16xf32>
      %c9_i32_175 = arith.constant 9 : i32
      %441 = arith.muli %431, %c9_i32_175 : i32
      %c1_i32_176 = arith.constant 1 : i32
      %442 = arith.addi %441, %c1_i32_176 : i32
      %443 = arith.index_cast %442 : i32 to index
      %444 = memref.load %arg3[%443] : memref<36xf32, #tpu.memory_space<smem>>
      %445 = vector.broadcast %444 : f32 to vector<8x16xf32>
      %446 = arith.mulf %445, %332 : vector<8x16xf32>
      %447 = arith.addf %440, %446 : vector<8x16xf32>
      %c9_i32_177 = arith.constant 9 : i32
      %448 = arith.muli %431, %c9_i32_177 : i32
      %c2_i32_178 = arith.constant 2 : i32
      %449 = arith.addi %448, %c2_i32_178 : i32
      %450 = arith.index_cast %449 : i32 to index
      %451 = memref.load %arg3[%450] : memref<36xf32, #tpu.memory_space<smem>>
      %452 = vector.broadcast %451 : f32 to vector<8x16xf32>
      %453 = arith.mulf %452, %336 : vector<8x16xf32>
      %454 = arith.addf %447, %453 : vector<8x16xf32>
      %c9_i32_179 = arith.constant 9 : i32
      %455 = arith.muli %431, %c9_i32_179 : i32
      %c3_i32_180 = arith.constant 3 : i32
      %456 = arith.addi %455, %c3_i32_180 : i32
      %457 = arith.index_cast %456 : i32 to index
      %458 = memref.load %arg3[%457] : memref<36xf32, #tpu.memory_space<smem>>
      %459 = vector.broadcast %458 : f32 to vector<8x16xf32>
      %460 = arith.mulf %459, %340 : vector<8x16xf32>
      %461 = arith.addf %454, %460 : vector<8x16xf32>
      %c9_i32_181 = arith.constant 9 : i32
      %462 = arith.muli %431, %c9_i32_181 : i32
      %c4_i32_182 = arith.constant 4 : i32
      %463 = arith.addi %462, %c4_i32_182 : i32
      %464 = arith.index_cast %463 : i32 to index
      %465 = memref.load %arg3[%464] : memref<36xf32, #tpu.memory_space<smem>>
      %466 = vector.broadcast %465 : f32 to vector<8x16xf32>
      %467 = arith.mulf %466, %344 : vector<8x16xf32>
      %468 = arith.addf %461, %467 : vector<8x16xf32>
      %c9_i32_183 = arith.constant 9 : i32
      %469 = arith.muli %431, %c9_i32_183 : i32
      %c5_i32_184 = arith.constant 5 : i32
      %470 = arith.addi %469, %c5_i32_184 : i32
      %471 = arith.index_cast %470 : i32 to index
      %472 = memref.load %arg3[%471] : memref<36xf32, #tpu.memory_space<smem>>
      %473 = vector.broadcast %472 : f32 to vector<8x16xf32>
      %474 = arith.mulf %473, %348 : vector<8x16xf32>
      %475 = arith.addf %468, %474 : vector<8x16xf32>
      %c9_i32_185 = arith.constant 9 : i32
      %476 = arith.muli %431, %c9_i32_185 : i32
      %c6_i32_186 = arith.constant 6 : i32
      %477 = arith.addi %476, %c6_i32_186 : i32
      %478 = arith.index_cast %477 : i32 to index
      %479 = memref.load %arg3[%478] : memref<36xf32, #tpu.memory_space<smem>>
      %480 = vector.broadcast %479 : f32 to vector<8x16xf32>
      %481 = arith.mulf %480, %352 : vector<8x16xf32>
      %482 = arith.addf %475, %481 : vector<8x16xf32>
      %c9_i32_187 = arith.constant 9 : i32
      %483 = arith.muli %431, %c9_i32_187 : i32
      %c7_i32_188 = arith.constant 7 : i32
      %484 = arith.addi %483, %c7_i32_188 : i32
      %485 = arith.index_cast %484 : i32 to index
      %486 = memref.load %arg3[%485] : memref<36xf32, #tpu.memory_space<smem>>
      %487 = vector.broadcast %486 : f32 to vector<8x16xf32>
      %488 = arith.mulf %487, %356 : vector<8x16xf32>
      %489 = arith.addf %482, %488 : vector<8x16xf32>
      %c9_i32_189 = arith.constant 9 : i32
      %490 = arith.muli %431, %c9_i32_189 : i32
      %c8_i32_190 = arith.constant 8 : i32
      %491 = arith.addi %490, %c8_i32_190 : i32
      %492 = arith.index_cast %491 : i32 to index
      %493 = memref.load %arg3[%492] : memref<36xf32, #tpu.memory_space<smem>>
      %494 = vector.broadcast %493 : f32 to vector<8x16xf32>
      %495 = arith.mulf %494, %360 : vector<8x16xf32>
      %496 = arith.addf %489, %495 : vector<8x16xf32>
      %c1_191 = arith.constant 1 : index
      %c1_192 = arith.constant 1 : index
      %497 = arith.index_cast %8 : i32 to index
      %c0_193 = arith.constant 0 : index
      %498 = vector.load %arg5[%c1_191, %c1_192, %497, %c0_193] : memref<2x4x16x16xf32, #tpu.memory_space<vmem>>, vector<1x1x8x16xf32>
      %499 = vector.shape_cast %498 : vector<1x1x8x16xf32> to vector<8x16xf32>
      %500 = vector.shape_cast %496 : vector<8x16xf32> to vector<1x1x8x16xf32>
      tpu.vector_store %arg5[%c1_191, %c1_192, %497, %c0_193], %500 {strides = array<i32>} : memref<2x4x16x16xf32, #tpu.memory_space<vmem>>, vector<1x1x8x16xf32>,
      %c2_i32_194 = arith.constant 2 : i32
      %501 = arith.addi %3, %c2_i32_194 : i32
      %c9_i32_195 = arith.constant 9 : i32
      %502 = arith.muli %501, %c9_i32_195 : i32
      %503 = arith.index_cast %502 : i32 to index
      %504 = memref.load %arg3[%503] : memref<36xf32, #tpu.memory_space<smem>>
      %505 = vector.broadcast %504 : f32 to vector<8x16xf32>
      %506 = arith.mulf %328, %505 : vector<8x16xf32>
      %507 = arith.index_cast %501 : i32 to index
      %508 = memref.load %arg4[%507] : memref<4xf32, #tpu.memory_space<smem>>
      %509 = vector.broadcast %508 : f32 to vector<8x16xf32>
      %510 = arith.addf %506, %509 : vector<8x16xf32>
      %c9_i32_196 = arith.constant 9 : i32
      %511 = arith.muli %501, %c9_i32_196 : i32
      %c1_i32_197 = arith.constant 1 : i32
      %512 = arith.addi %511, %c1_i32_197 : i32
      %513 = arith.index_cast %512 : i32 to index
      %514 = memref.load %arg3[%513] : memref<36xf32, #tpu.memory_space<smem>>
      %515 = vector.broadcast %514 : f32 to vector<8x16xf32>
      %516 = arith.mulf %515, %332 : vector<8x16xf32>
      %517 = arith.addf %510, %516 : vector<8x16xf32>
      %c9_i32_198 = arith.constant 9 : i32
      %518 = arith.muli %501, %c9_i32_198 : i32
      %c2_i32_199 = arith.constant 2 : i32
      %519 = arith.addi %518, %c2_i32_199 : i32
      %520 = arith.index_cast %519 : i32 to index
      %521 = memref.load %arg3[%520] : memref<36xf32, #tpu.memory_space<smem>>
      %522 = vector.broadcast %521 : f32 to vector<8x16xf32>
      %523 = arith.mulf %522, %336 : vector<8x16xf32>
      %524 = arith.addf %517, %523 : vector<8x16xf32>
      %c9_i32_200 = arith.constant 9 : i32
      %525 = arith.muli %501, %c9_i32_200 : i32
      %c3_i32_201 = arith.constant 3 : i32
      %526 = arith.addi %525, %c3_i32_201 : i32
      %527 = arith.index_cast %526 : i32 to index
      %528 = memref.load %arg3[%527] : memref<36xf32, #tpu.memory_space<smem>>
      %529 = vector.broadcast %528 : f32 to vector<8x16xf32>
      %530 = arith.mulf %529, %340 : vector<8x16xf32>
      %531 = arith.addf %524, %530 : vector<8x16xf32>
      %c9_i32_202 = arith.constant 9 : i32
      %532 = arith.muli %501, %c9_i32_202 : i32
      %c4_i32_203 = arith.constant 4 : i32
      %533 = arith.addi %532, %c4_i32_203 : i32
      %534 = arith.index_cast %533 : i32 to index
      %535 = memref.load %arg3[%534] : memref<36xf32, #tpu.memory_space<smem>>
      %536 = vector.broadcast %535 : f32 to vector<8x16xf32>
      %537 = arith.mulf %536, %344 : vector<8x16xf32>
      %538 = arith.addf %531, %537 : vector<8x16xf32>
      %c9_i32_204 = arith.constant 9 : i32
      %539 = arith.muli %501, %c9_i32_204 : i32
      %c5_i32_205 = arith.constant 5 : i32
      %540 = arith.addi %539, %c5_i32_205 : i32
      %541 = arith.index_cast %540 : i32 to index
      %542 = memref.load %arg3[%541] : memref<36xf32, #tpu.memory_space<smem>>
      %543 = vector.broadcast %542 : f32 to vector<8x16xf32>
      %544 = arith.mulf %543, %348 : vector<8x16xf32>
      %545 = arith.addf %538, %544 : vector<8x16xf32>
      %c9_i32_206 = arith.constant 9 : i32
      %546 = arith.muli %501, %c9_i32_206 : i32
      %c6_i32_207 = arith.constant 6 : i32
      %547 = arith.addi %546, %c6_i32_207 : i32
      %548 = arith.index_cast %547 : i32 to index
      %549 = memref.load %arg3[%548] : memref<36xf32, #tpu.memory_space<smem>>
      %550 = vector.broadcast %549 : f32 to vector<8x16xf32>
      %551 = arith.mulf %550, %352 : vector<8x16xf32>
      %552 = arith.addf %545, %551 : vector<8x16xf32>
      %c9_i32_208 = arith.constant 9 : i32
      %553 = arith.muli %501, %c9_i32_208 : i32
      %c7_i32_209 = arith.constant 7 : i32
      %554 = arith.addi %553, %c7_i32_209 : i32
      %555 = arith.index_cast %554 : i32 to index
      %556 = memref.load %arg3[%555] : memref<36xf32, #tpu.memory_space<smem>>
      %557 = vector.broadcast %556 : f32 to vector<8x16xf32>
      %558 = arith.mulf %557, %356 : vector<8x16xf32>
      %559 = arith.addf %552, %558 : vector<8x16xf32>
      %c9_i32_210 = arith.constant 9 : i32
      %560 = arith.muli %501, %c9_i32_210 : i32
      %c8_i32_211 = arith.constant 8 : i32
      %561 = arith.addi %560, %c8_i32_211 : i32
      %562 = arith.index_cast %561 : i32 to index
      %563 = memref.load %arg3[%562] : memref<36xf32, #tpu.memory_space<smem>>
      %564 = vector.broadcast %563 : f32 to vector<8x16xf32>
      %565 = arith.mulf %564, %360 : vector<8x16xf32>
      %566 = arith.addf %559, %565 : vector<8x16xf32>
      %c1_212 = arith.constant 1 : index
      %c2_213 = arith.constant 2 : index
      %567 = arith.index_cast %8 : i32 to index
      %c0_214 = arith.constant 0 : index
      %568 = vector.load %arg5[%c1_212, %c2_213, %567, %c0_214] : memref<2x4x16x16xf32, #tpu.memory_space<vmem>>, vector<1x1x8x16xf32>
      %569 = vector.shape_cast %568 : vector<1x1x8x16xf32> to vector<8x16xf32>
      %570 = vector.shape_cast %566 : vector<8x16xf32> to vector<1x1x8x16xf32>
      tpu.vector_store %arg5[%c1_212, %c2_213, %567, %c0_214], %570 {strides = array<i32>} : memref<2x4x16x16xf32, #tpu.memory_space<vmem>>, vector<1x1x8x16xf32>,
      %c3_i32_215 = arith.constant 3 : i32
      %571 = arith.addi %3, %c3_i32_215 : i32
      %c9_i32_216 = arith.constant 9 : i32
      %572 = arith.muli %571, %c9_i32_216 : i32
      %573 = arith.index_cast %572 : i32 to index
      %574 = memref.load %arg3[%573] : memref<36xf32, #tpu.memory_space<smem>>
      %575 = vector.broadcast %574 : f32 to vector<8x16xf32>
      %576 = arith.mulf %328, %575 : vector<8x16xf32>
      %577 = arith.index_cast %571 : i32 to index
      %578 = memref.load %arg4[%577] : memref<4xf32, #tpu.memory_space<smem>>
      %579 = vector.broadcast %578 : f32 to vector<8x16xf32>
      %580 = arith.addf %576, %579 : vector<8x16xf32>
      %c9_i32_217 = arith.constant 9 : i32
      %581 = arith.muli %571, %c9_i32_217 : i32
      %c1_i32_218 = arith.constant 1 : i32
      %582 = arith.addi %581, %c1_i32_218 : i32
      %583 = arith.index_cast %582 : i32 to index
      %584 = memref.load %arg3[%583] : memref<36xf32, #tpu.memory_space<smem>>
      %585 = vector.broadcast %584 : f32 to vector<8x16xf32>
      %586 = arith.mulf %585, %332 : vector<8x16xf32>
      %587 = arith.addf %580, %586 : vector<8x16xf32>
      %c9_i32_219 = arith.constant 9 : i32
      %588 = arith.muli %571, %c9_i32_219 : i32
      %c2_i32_220 = arith.constant 2 : i32
      %589 = arith.addi %588, %c2_i32_220 : i32
      %590 = arith.index_cast %589 : i32 to index
      %591 = memref.load %arg3[%590] : memref<36xf32, #tpu.memory_space<smem>>
      %592 = vector.broadcast %591 : f32 to vector<8x16xf32>
      %593 = arith.mulf %592, %336 : vector<8x16xf32>
      %594 = arith.addf %587, %593 : vector<8x16xf32>
      %c9_i32_221 = arith.constant 9 : i32
      %595 = arith.muli %571, %c9_i32_221 : i32
      %c3_i32_222 = arith.constant 3 : i32
      %596 = arith.addi %595, %c3_i32_222 : i32
      %597 = arith.index_cast %596 : i32 to index
      %598 = memref.load %arg3[%597] : memref<36xf32, #tpu.memory_space<smem>>
      %599 = vector.broadcast %598 : f32 to vector<8x16xf32>
      %600 = arith.mulf %599, %340 : vector<8x16xf32>
      %601 = arith.addf %594, %600 : vector<8x16xf32>
      %c9_i32_223 = arith.constant 9 : i32
      %602 = arith.muli %571, %c9_i32_223 : i32
      %c4_i32_224 = arith.constant 4 : i32
      %603 = arith.addi %602, %c4_i32_224 : i32
      %604 = arith.index_cast %603 : i32 to index
      %605 = memref.load %arg3[%604] : memref<36xf32, #tpu.memory_space<smem>>
      %606 = vector.broadcast %605 : f32 to vector<8x16xf32>
      %607 = arith.mulf %606, %344 : vector<8x16xf32>
      %608 = arith.addf %601, %607 : vector<8x16xf32>
      %c9_i32_225 = arith.constant 9 : i32
      %609 = arith.muli %571, %c9_i32_225 : i32
      %c5_i32_226 = arith.constant 5 : i32
      %610 = arith.addi %609, %c5_i32_226 : i32
      %611 = arith.index_cast %610 : i32 to index
      %612 = memref.load %arg3[%611] : memref<36xf32, #tpu.memory_space<smem>>
      %613 = vector.broadcast %612 : f32 to vector<8x16xf32>
      %614 = arith.mulf %613, %348 : vector<8x16xf32>
      %615 = arith.addf %608, %614 : vector<8x16xf32>
      %c9_i32_227 = arith.constant 9 : i32
      %616 = arith.muli %571, %c9_i32_227 : i32
      %c6_i32_228 = arith.constant 6 : i32
      %617 = arith.addi %616, %c6_i32_228 : i32
      %618 = arith.index_cast %617 : i32 to index
      %619 = memref.load %arg3[%618] : memref<36xf32, #tpu.memory_space<smem>>
      %620 = vector.broadcast %619 : f32 to vector<8x16xf32>
      %621 = arith.mulf %620, %352 : vector<8x16xf32>
      %622 = arith.addf %615, %621 : vector<8x16xf32>
      %c9_i32_229 = arith.constant 9 : i32
      %623 = arith.muli %571, %c9_i32_229 : i32
      %c7_i32_230 = arith.constant 7 : i32
      %624 = arith.addi %623, %c7_i32_230 : i32
      %625 = arith.index_cast %624 : i32 to index
      %626 = memref.load %arg3[%625] : memref<36xf32, #tpu.memory_space<smem>>
      %627 = vector.broadcast %626 : f32 to vector<8x16xf32>
      %628 = arith.mulf %627, %356 : vector<8x16xf32>
      %629 = arith.addf %622, %628 : vector<8x16xf32>
      %c9_i32_231 = arith.constant 9 : i32
      %630 = arith.muli %571, %c9_i32_231 : i32
      %c8_i32_232 = arith.constant 8 : i32
      %631 = arith.addi %630, %c8_i32_232 : i32
      %632 = arith.index_cast %631 : i32 to index
      %633 = memref.load %arg3[%632] : memref<36xf32, #tpu.memory_space<smem>>
      %634 = vector.broadcast %633 : f32 to vector<8x16xf32>
      %635 = arith.mulf %634, %360 : vector<8x16xf32>
      %636 = arith.addf %629, %635 : vector<8x16xf32>
      %c1_233 = arith.constant 1 : index
      %c3_234 = arith.constant 3 : index
      %637 = arith.index_cast %8 : i32 to index
      %c0_235 = arith.constant 0 : index
      %638 = vector.load %arg5[%c1_233, %c3_234, %637, %c0_235] : memref<2x4x16x16xf32, #tpu.memory_space<vmem>>, vector<1x1x8x16xf32>
      %639 = vector.shape_cast %638 : vector<1x1x8x16xf32> to vector<8x16xf32>
      %640 = vector.shape_cast %636 : vector<8x16xf32> to vector<1x1x8x16xf32>
      tpu.vector_store %arg5[%c1_233, %c3_234, %637, %c0_235], %640 {strides = array<i32>} : memref<2x4x16x16xf32, #tpu.memory_space<vmem>>, vector<1x1x8x16xf32>,
    }
    %c2_i32_2 = arith.constant 2 : i32
    return
  }
  func.func @transform_0(%arg0: i32, %arg1: i32) -> (i32, i32, i32) {
    %c0_i32 = arith.constant 0 : i32
    %c0_i32_0 = arith.constant 0 : i32
    %c0_i32_1 = arith.constant 0 : i32
    return %arg0, %c0_i32, %c0_i32_0 : i32, i32, i32
  }
  func.func @transform_1(%arg0: i32, %arg1: i32) -> i32 {
    %c0_i32 = arith.constant 0 : i32
    %c0_i32_0 = arith.constant 0 : i32
    return %c0_i32 : i32
  }
  func.func @transform_2(%arg0: i32, %arg1: i32) -> i32 {
    %c0_i32 = arith.constant 0 : i32
    %c0_i32_0 = arith.constant 0 : i32
    return %c0_i32 : i32
  }
  func.func @transform_3(%arg0: i32, %arg1: i32) -> (i32, i32, i32, i32) {
    %c0_i32 = arith.constant 0 : i32
    %c0_i32_0 = arith.constant 0 : i32
    %c0_i32_1 = arith.constant 0 : i32
    return %arg0, %arg1, %c0_i32, %c0_i32_0 : i32, i32, i32, i32
  }
}

</mosaic_0001>

<bundles_post_ra>
// kernel: input_projection_forward.1
= control target key start
LH: loop header
LB: loop body
LE: loop exit
PB: predicated region body
PF: predicated region fallthrough
CT: control target
= control target key end

     0   :  { %s1376_s0 = inlined_call_operand.vmem [shape: f32[2,16,16], index: 0, kind: input, shape index: {}]   ;;  %s1377_s1 = inlined_call_operand.vmem [shape: f32[36], index: 1, kind: input, shape index: {}]   ;;  %s1378_s2 = inlined_call_operand.vmem [shape: f32[4], index: 2, kind: input, shape index: {}]   ;;  %s1379_s3 = inlined_call_operand.hbm [shape: f32[2,4,16,16], index: 3, kind: output, shape index: {}]  }
   0x1   :  { %1389 = sst [smem:[#allocation19_spill]] %s1379_s3 }
   0x2   :  { %8 = vsyncpa [#allocation5], 0 }
   0x3   :  { %9 = vsyncpa [#allocation7], 0 }
   0x4   :  { %10 = vsyncpa [#allocation4], 0  ;;  %s19_s14 = sshll.u32 %s1377_s1, 4  ;;  %s29_s17 = sshll.u32 %s1378_s2, 4  ;;  %s20_s14 = int_to_ptr.vmem [resolvable:$true] %s19_s14  ;;  %s30_s17 = int_to_ptr.vmem [resolvable:$true] %s29_s17 }
   0x5   :  { %s801_s18 = scalar_lea.vmem %s20_s14, 16  ;;  %p806_p1 = scmp.lt.s32.totalorder %s20_s14, %s20_s14 }
   0x6   :  { %p802_p0 = scmp.ne.s32.totalorder %s20_s14, %s801_s18  ;;  %p807_p2 = scmp.lt.s32.totalorder %s801_s18, %s801_s18 }
   0x8   :  { %p808_p3 = por %p807_p2, %p806_p1 }
   0xa   :  { %p809_p4 = pnand %p808_p3, %p802_p0 }
   0xc   :  { %812 = shalt.err (!%p809_p4)
}
   0xd   :  { %s861_s19 = smov [#allocation3]   ;;  %s813_s20 = scalar_lea.vmem %s30_s17, 16 }
   0xe   :  { %22 = dma.vmem_to_smem %s20_s14, 16, %s861_s19, [#allocation5]  }
   0xf   :  { %p814_p5 = scmp.ne.s32.totalorder %s30_s17, %s813_s20  ;;  %p818_p6 = scmp.lt.s32.totalorder %s30_s17, %s30_s17 }
  0x10   :  { %p819_p7 = scmp.lt.s32.totalorder %s813_s20, %s813_s20 }
  0x12   :  { %p820_p8 = por %p819_p7, %p818_p6 }
  0x14   :  { %p821_p9 = pnand %p820_p8, %p814_p5 }
  0x16   :  { %824 = shalt.err (!%p821_p9)
}
  0x17   :  { %s862_s1 = smov [#allocation6]  }
  0x18   :  { %32 = dma.vmem_to_smem %s30_s17, 16, %s862_s1, [#allocation7]  }
  0x19   :  { %851 = dma.done.wait [#allocation5], 16  }
  0x1a   :  { %852 = vsyncadd [#allocation5], 4294967280 }
  0x1b   :  { %853 = dma.done.wait [#allocation7], 16  }
  0x1c   :  { %854 = vsyncadd [#allocation7], 4294967280 }
  0x1d   :  { %39 = sfence }
  0x1e   :  { %v82_v0 = vld [vmem:[%s1376_s0] sm:$0xff]  ;;  %s863_s22 = smov 127   ;;  %s864_s23 = smov 1   ;;  %vm44_vm0 = vcmask 130048   ;;  %vm47_vm1 = vcmask 123904   ;;  %v83_v1 = vld [vmem:[%s1376_s0 + $0x8] sm:$0xff] }
  0x1f   :  { %86 = vrot.lane.b32.xlu1 %v82_v0, %s863_s22  ;;  %68 = vrot.lane.b32.xlu0 %v82_v0, %s864_s23  ;;  %v655_v2 = vld [vmem:[%s1376_s0 + $0x18] sm:$0xff]  ;;  %v654_v3 = vld [vmem:[%s1376_s0 + $0x10] sm:$0xff]  ;;  %v865_v4 = vmov 0.0   ;;  %vm93_vm2 = vcmask 121856   ;;  %vm74_vm3 = vcmask 130056   ;;  %s941_s0 = smov 0  }
  0x20   :  { %52 = vst.msk [vmem:[#allocation2 + $0x30] sm:$0xff] %vm44_vm0, %v865_v4  ;;  %53 = vst.msk [vmem:[#allocation2 + $0x38] sm:$0xff] %vm44_vm0, %v865_v4 }
  0x21   :  { %45 = vst.msk [vmem:[#allocation2] sm:$0xff] %vm44_vm0, %v865_v4  ;;  %46 = vst.msk [vmem:[#allocation2 + $0x8] sm:$0xff] %vm44_vm0, %v865_v4 }
  0x22   :  { %49 = vst.msk [vmem:[#allocation2 + $0x18] sm:$0xff] %vm44_vm0, %v865_v4  ;;  %50 = vst.msk [vmem:[#allocation2 + $0x20] sm:$0xff] %vm44_vm0, %v865_v4 }
  0x23   :  { %55 = vst.msk [vmem:[#allocation2 + $0x48] sm:$0xff] %vm44_vm0, %v865_v4  ;;  %56 = vst.msk [vmem:[#allocation2 + $0x50] sm:$0xff] %vm44_vm0, %v865_v4  ;;  %88 = vrot.lane.b32.xlu1 %v83_v1, %s863_s22  ;;  %70 = vrot.lane.b32.xlu0 %v83_v1, %s864_s23 }
  0x24   :  { %58 = vst.msk [vmem:[#allocation2 + $0x60] sm:$0xff] %vm44_vm0, %v865_v4  ;;  %59 = vst.msk [vmem:[#allocation2 + $0x68] sm:$0xff] %vm44_vm0, %v865_v4 }
  0x25   :  { %61 = vst.msk [vmem:[#allocation2 + $0x78] sm:$0xff] %vm44_vm0, %v865_v4  ;;  %62 = vst.msk [vmem:[#allocation2 + $0x80] sm:$0xff] %vm44_vm0, %v865_v4 }
  0x26   :  { %51 = vst.msk [vmem:[#allocation2 + $0x28] sm:$0x3] %vm47_vm1, %v865_v4  ;;  %54 = vst.msk [vmem:[#allocation2 + $0x40] sm:$0x3] %vm47_vm1, %v865_v4 }
  0x27   :  { %60 = vst.msk [vmem:[#allocation2 + $0x70] sm:$0x3] %vm47_vm1, %v865_v4  ;;  %48 = vst.msk [vmem:[#allocation2 + $0x10] sm:$0x3] %vm47_vm1, %v865_v4  ;;  %103 = vrot.lane.b32.xlu1 %v655_v2, %s864_s23  ;;  %101 = vrot.lane.b32.xlu0 %v654_v3, %s864_s23 }
  0x28   :  { %57 = vst.msk [vmem:[#allocation2 + $0x58] sm:$0x3] %vm47_vm1, %v865_v4  ;;  %63 = vst.msk [vmem:[#allocation2 + $0x88] sm:$0x3] %vm47_vm1, %v865_v4 }
  0x29   :  { %80 = vst.msk [vmem:[#allocation2 + $0x19] sm:$0xff] %vm44_vm0, %v82_v0  ;;  %81 = vst.msk [vmem:[#allocation2 + $0x21] sm:$0xff] %vm44_vm0, %v83_v1 }
  0x2a   :  { %113 = vst.msk [vmem:[#allocation2 + $0x61] sm:$0xff] %vm44_vm0, %v654_v3  ;;  %114 = vst.msk [vmem:[#allocation2 + $0x69] sm:$0xff] %vm44_vm0, %v655_v2 }
  0x2b   :  { %121 = vrot.lane.b32.xlu1 %v655_v2, %s863_s22  ;;  %119 = vrot.lane.b32.xlu0 %v654_v3, %s863_s22 }
  0x91   :  { %v87_v5 = vpop.permute.xlu1 %86  ;;  %v69_v6 = vpop.permute.xlu0 %68 }
  0x92   :  { %94 = vst.msk [vmem:[#allocation2 + $0x31] sm:$0xff] %vm93_vm2, %v87_v5 }
  0x93   :  { %75 = vst.msk [vmem:[#allocation2 + $0x1] sm:$0xff] %vm74_vm3, %v69_v6 }
  0x95   :  { %v89_v7 = vpop.permute.xlu1 %88  ;;  %v71_v8 = vpop.permute.xlu0 %70 }
  0x96   :  { %95 = vst.msk [vmem:[#allocation2 + $0x39] sm:$0xff] %vm93_vm2, %v89_v7 }
  0x97   :  { %76 = vst.msk [vmem:[#allocation2 + $0x9] sm:$0xff] %vm74_vm3, %v71_v8 }
  0x99   :  { %v104_v9 = vpop.permute.xlu1 %103  ;;  %v102_v10 = vpop.permute.xlu0 %101 }
  0x9a   :  { %109 = vst.msk [vmem:[#allocation2 + $0x51] sm:$0xff] %vm74_vm3, %v104_v9  ;;  %108 = vst.msk [vmem:[#allocation2 + $0x49] sm:$0xff] %vm74_vm3, %v102_v10 }
  0x9d   :  { %v122_v11 = vpop.permute.xlu1 %121  ;;  %v120_v12 = vpop.permute.xlu0 %119 }
  0x9e   :  { %127 = vst.msk [vmem:[#allocation2 + $0x81] sm:$0xff] %vm93_vm2, %v122_v11  ;;  %126 = vst.msk [vmem:[#allocation2 + $0x79] sm:$0xff] %vm93_vm2, %v120_v12 }
  0x9f LB: > { %1390 = sst [smem:[#allocation12_spill]] %s859_s0  ;;  %s1380_s5 = sshll.u32 %s859_s0, 3  ;;  %s859_s0 = sphi %s941_s0, %s134_s0  }
  0xa0   : > { %s163_s30 = sld [smem:[#allocation3]]  ;;  %s949_s6 = sld [smem:[#allocation3 + $0x1]] }
  0xa1   : > { %s946_s4 = sld [smem:[#allocation6]]  ;;  %s951_s7 = sld [smem:[#allocation3 + $0x2]] }
  0xa2   : > { %s955_s8 = scalar_lea.vmem [#allocation2], %s1380_s5  ;;  %s960_s9 = sld [smem:[#allocation3 + $0x3]] }
  0xa3   : > { %s962_s10 = sld [smem:[#allocation3 + $0x4]]  ;;  %s967_s11 = sld [smem:[#allocation3 + $0x5]] }
  0xa4   : > { %s974_s12 = sld [smem:[#allocation3 + $0x6]]  ;;  %s976_s13 = sld [smem:[#allocation3 + $0x7]] }
  0xa5   : > { %v958_v13 = vld [vmem:[%s955_s8] sm:$0xff]  ;;  %v965_v14 = vld [vmem:[%s955_s8 + $0x18] sm:$0xff]  ;;  %v970_v16 = vld [vmem:[%s955_s8 + $0x30] sm:$0xff]  ;;  %s985_s14 = sld [smem:[#allocation3 + $0x8]]  ;;  %s987_s15 = sld [smem:[#allocation3 + $0x9]] }
  0xa6   : > { %v164_v15 = vstv %s163_s30  ;;  %v979_v19 = vld [vmem:[%s955_s8 + $0x48] sm:$0xff]  ;;  %v171_v21 = vstv %s949_s6  ;;  %s991_s16 = sld [smem:[#allocation6 + $0x1]]  ;;  %s993_s17 = sld [smem:[#allocation3 + $0xa]]  ;;  %v996_v25 = vld [vmem:[%s955_s8 + $0x60] sm:$0xff] }
  0xa7   : > { %v165_v17 = vmul.f32 %v164_v15, %v958_v13  ;;  %v167_v18 = vstv %s946_s4  ;;  %v982_v20 = vld [vmem:[%s955_s8 + $0x1] sm:$0xff]  ;;  %v172_v23 = vmul.f32 %v965_v14, %v171_v21  ;;  %v176_v24 = vstv %s951_s7  ;;  %v1000_v27 = vld [vmem:[%s955_s8 + $0x19] sm:$0xff]  ;;  %s1004_s18 = sld [smem:[#allocation3 + $0xb]]  ;;  %s1006_s19 = sld [smem:[#allocation3 + $0xc]] }
  0xa8   : > { %v393_v26 = vmul.f32 %v979_v19, %v164_v15  ;;  %v177_v28 = vmul.f32 %v970_v16, %v176_v24  ;;  %v181_v29 = vstv %s960_s9  ;;  %v1009_v30 = vld [vmem:[%s955_s8 + $0x31] sm:$0xff]  ;;  %s1015_s20 = sld [smem:[#allocation3 + $0xd]]  ;;  %s1017_s1 = sld [smem:[#allocation3 + $0xe]]  ;;  %v1023_v35 = vld [vmem:[%s955_s8 + $0x2] sm:$0xff]  ;;  %v399_v37 = vmul.f32 %v996_v25, %v171_v21  ;;  %v1052_v46 = vld [vmem:[%s955_s8 + $0x1a] sm:$0xff] }
  0xa9   : > { %v168_v22 = vadd.f32 %v167_v18, %v165_v17  ;;  %v182_v32 = vmul.f32 %v982_v20, %v181_v29  ;;  %v186_v33 = vstv %s962_s10  ;;  %v1020_v34 = vld [vmem:[%s955_s8 + $0x78] sm:$0xff]  ;;  %v191_v36 = vstv %s967_s11  ;;  %s1026_s2 = sld [smem:[#allocation3 + $0xf]]  ;;  %s1028_s21 = sld [smem:[#allocation3 + $0x10]]  ;;  %v1126_v21 = vld [vmem:[%s955_s8 + $0x49] sm:$0xff] }
  0xaa   : > { %v187_v39 = vmul.f32 %v1000_v27, %v186_v33  ;;  %v196_v40 = vstv %s974_s12  ;;  %s1035_s22 = sld [smem:[#allocation3 + $0x11]]  ;;  %s1037_s23 = sld [smem:[#allocation3 + $0x12]]  ;;  %v396_v41 = vadd.f32 %v393_v26, %v167_v18  ;;  %v192_v42 = vmul.f32 %v1009_v30, %v191_v36  ;;  %v1055_v47 = vld [vmem:[%s955_s8 + $0x32] sm:$0xff] }
  0xab   : > { %v173_v31 = vadd.f32 %v172_v23, %v168_v22  ;;  %v201_v43 = vstv %s976_s13  ;;  %v215_v44 = vstv %s987_s15  ;;  %s1044_s24 = sld [smem:[#allocation6 + $0x2]]  ;;  %s1046_s25 = sld [smem:[#allocation3 + $0x13]]  ;;  %v1049_v45 = vmul.f32 %v1020_v34, %v176_v24 }
  0xac   : > { %v197_v49 = vmul.f32 %v1023_v35, %v196_v40  ;;  %v216_v50 = vmul.f32 %v215_v44, %v958_v13  ;;  %v218_v51 = vstv %s991_s16  ;;  %s1064_s26 = sld [smem:[#allocation3 + $0x14]]  ;;  %s1066_s27 = sld [smem:[#allocation3 + $0x15]]  ;;  %v206_v52 = vstv %s985_s14 }
  0xad   : > { %v178_v38 = vadd.f32 %v177_v28, %v173_v31  ;;  %v222_v53 = vstv %s993_s17  ;;  %v227_v54 = vstv %s1004_s18  ;;  %v232_v55 = vstv %s1006_s19  ;;  %s1072_s28 = sld [smem:[#allocation3 + $0x16]]  ;;  %s1074_s29 = sld [smem:[#allocation3 + $0x17]] }
  0xae   : > { %1391 = sst [smem:[#allocation13_spill]] %s1015_s20  ;;  %v219_v57 = vadd.f32 %v218_v51, %v216_v50  ;;  %v223_v58 = vmul.f32 %v965_v14, %v222_v53  ;;  %v228_v59 = vmul.f32 %v970_v16, %v227_v54  ;;  %v202_v60 = vmul.f32 %v1052_v46, %v201_v43  ;;  %s1095_s30 = sld [smem:[#allocation3 + $0x18]] }
  0xaf   : > { %1392 = sst [smem:[#allocation14_spill]] %s1017_s1  ;;  %v183_v48 = vadd.f32 %v182_v32, %v178_v38  ;;  %v237_v61 = vstv %s1015_s20  ;;  %v242_v62 = vstv %s1017_s1  ;;  %v400_v63 = vadd.f32 %v399_v37, %v396_v41  ;;  %s1105_s4 = sld [smem:[#allocation3 + $0x1b]] }
  0xb0   : > { %1393 = sst [smem:[#allocation15_spill]] %s1026_s2  ;;  %v207_v1 = vmul.f32 %v1055_v47, %v206_v52  ;;  %v224_v2 = vadd.f32 %v223_v58, %v219_v57  ;;  %v233_v3 = vmul.f32 %v982_v20, %v232_v55  ;;  %v238_v4 = vmul.f32 %v1000_v27, %v237_v61  ;;  %s1111_s7 = sld [smem:[#allocation3 + $0x1c]] }
  0xb1   : > { %1394 = sst [smem:[#allocation16_spill]] %s1037_s23  ;;  %v188_v56 = vadd.f32 %v187_v39, %v183_v48  ;;  %v243_v5 = vmul.f32 %v1009_v30, %v242_v62  ;;  %v247_v6 = vstv %s1026_s2  ;;  %v266_v7 = vstv %s1037_s23  ;;  %s1107_s6 = sld [smem:[#allocation6 + $0x3]] }
  0xb2   : > { %1395 = sst [smem:[#allocation17_spill]] %s1044_s24  ;;  %v229_v9 = vadd.f32 %v228_v59, %v224_v2  ;;  %v252_v10 = vstv %s1028_s21  ;;  %v257_v11 = vstv %s1035_s22  ;;  %v267_v12 = vmul.f32 %v266_v7, %v958_v13  ;;  %s1121_s3 = sld [smem:[#allocation3 + $0x19]] }
  0xb3   : > { %1396 = sst [smem:[#allocation18_spill]] %s1064_s26  ;;  %v193_v0 = vadd.f32 %v192_v42, %v188_v56  ;;  %s1113_s5 = sld [smem:[#allocation3 + $0x1d]]  ;;  %v269_v15 = vstv %s1044_s24  ;;  %v273_v17 = vstv %s1046_s25  ;;  %v278_v18 = vstv %s1064_s26 }
  0xb4   : > { %s1123_s1 = sld [smem:[#allocation3 + $0x1e]]  ;;  %v234_v23 = vadd.f32 %v233_v3, %v229_v9  ;;  %v274_v24 = vmul.f32 %v965_v14, %v273_v17  ;;  %v279_v26 = vmul.f32 %v970_v16, %v278_v18  ;;  %s1134_s20 = sld [smem:[#allocation3 + $0x1a]]  ;;  %v270_v28 = vadd.f32 %v269_v15, %v267_v12 }
  0xb5   : > { %v198_v8 = vadd.f32 %v197_v49, %v193_v0  ;;  %v283_v31 = vstv %s1066_s27  ;;  %v288_v32 = vstv %s1072_s28  ;;  %v293_v37 = vstv %s1074_s29  ;;  %s1141_s23 = sld [smem:[#allocation3 + $0x1f]]  ;;  %s1146_s26 = sld [smem:[#allocation3 + $0x20]] }
  0xb6   : > { %v239_v39 = vadd.f32 %v238_v4, %v234_v23  ;;  %v248_v41 = vmul.f32 %v1023_v35, %v247_v6  ;;  %v407_v42 = vmul.f32 %v1126_v21, %v181_v29  ;;  %v253_v48 = vmul.f32 %v1052_v46, %v252_v10  ;;  %s1397_s2 = sshll.u32 %s859_s0, 3  ;;  %s1173_s9 = sld [smem:[#allocation3 + $0x21]] }
  0xb7   : > { %v203_v22 = vadd.f32 %v202_v60, %v198_v8  ;;  %v275_v49 = vadd.f32 %v274_v24, %v270_v28  ;;  %v284_v50 = vmul.f32 %v982_v20, %v283_v31  ;;  %v404_v56 = vadd.f32 %v1049_v45, %v400_v63  ;;  %s1160_s24 = scalar_lea.vmem [#allocation8], %s1397_s2  ;;  %s1183_s2 = sld [smem:[#allocation3 + $0x22]] }
  0xb8   : > { %v244_v29 = vadd.f32 %v243_v5, %v239_v39  ;;  %v258_v57 = vmul.f32 %v1055_v47, %v257_v11  ;;  %v289_v58 = vmul.f32 %v1000_v27, %v288_v32  ;;  %v294_v45 = vmul.f32 %v1009_v30, %v293_v37  ;;  %v1186_v5 = vld [vmem:[%s955_s8 + $0x61] sm:$0xff]  ;;  %s1199_s0 = sld [smem:[#allocation3 + $0x23]]  ;;  %v1206_v39 = vld [vmem:[%s955_s8 + $0x79] sm:$0xff] }
  0xb9   : > { %v208_v38 = vadd.f32 %v207_v1, %v203_v22  ;;  %v280_v59 = vadd.f32 %v279_v26, %v275_v49  ;;  %v298_v60 = vstv %s1095_s30  ;;  %v317_v63 = vstv %s1105_s4 }
  0xba   : > { %v320_v0 = vstv %s1107_s6  ;;  %v249_v1 = vadd.f32 %v248_v41, %v244_v29  ;;  %v318_v2 = vmul.f32 %v317_v63, %v958_v13  ;;  %v324_v3 = vstv %s1111_s7  ;;  %v1216_v29 = vld [vmem:[%s955_s8 + $0x4a] sm:$0xff] }
  0xbb   : > { %211 = vst.msk [vmem:[%s1160_s24] sm:$0xff] %vm44_vm0, %v208_v38  ;;  %v329_v4 = vstv %s1113_s5  ;;  %v285_v8 = vadd.f32 %v284_v50, %v280_v59  ;;  %v303_v9 = vstv %s1121_s3  ;;  %v325_v12 = vmul.f32 %v965_v14, %v324_v3  ;;  %s1404_s3 = sld [smem:[#allocation12_spill]] }
  0xbc   : > { %v334_v22 = vstv %s1123_s1  ;;  %v254_v23 = vadd.f32 %v253_v48, %v249_v1  ;;  %v308_v13 = vstv %s1134_s20  ;;  %v321_v24 = vadd.f32 %v320_v0, %v318_v2 }
  0xbd   : > { %v330_v26 = vmul.f32 %v970_v16, %v329_v4  ;;  %v290_v28 = vadd.f32 %v289_v58, %v285_v8  ;;  %v299_v38 = vmul.f32 %v1023_v35, %v298_v60  ;;  %v339_v14 = vstv %s1141_s23 }
  0xbe   : > { %v411_v41 = vmul.f32 %v1186_v5, %v186_v33  ;;  %v259_v48 = vadd.f32 %v258_v57, %v254_v23  ;;  %v326_v16 = vadd.f32 %v325_v12, %v321_v24  ;;  %v335_v49 = vmul.f32 %v982_v20, %v334_v22 }
  0xbf   : > { %v344_v50 = vstv %s1146_s26  ;;  %v295_v58 = vadd.f32 %v294_v45, %v290_v28  ;;  %v304_v59 = vmul.f32 %v1052_v46, %v303_v9  ;;  %v309_v33 = vmul.f32 %v1055_v47, %v308_v13  ;;  %v1231_v45 = vld [vmem:[%s955_s8 + $0x62] sm:$0xff] }
  0xc0   : > { %v408_v57 = vadd.f32 %v407_v42, %v404_v56  ;;  %696 = vst.msk [vmem:[%s1160_s24 + $0x10] sm:$0xff] %vm44_vm0, %v259_v48  ;;  %v331_v20 = vadd.f32 %v330_v26, %v326_v16  ;;  %v340_v1 = vmul.f32 %v1000_v27, %v339_v14  ;;  %v349_v2 = vstv %s1173_s9  ;;  %v1244_v26 = vld [vmem:[%s955_s8 + $0x7a] sm:$0xff] }
  0xc1   : > { %v415_v8 = vmul.f32 %v1206_v39, %v191_v36  ;;  %v300_v12 = vadd.f32 %v299_v38, %v295_v58  ;;  %v345_v42 = vmul.f32 %v1009_v30, %v344_v50  ;;  %v419_v23 = vmul.f32 %v1216_v29, %v196_v40 }
  0xc2   : > { %v412_v56 = vadd.f32 %v411_v41, %v408_v57  ;;  %v336_v27 = vadd.f32 %v335_v49, %v331_v20  ;;  %v354_v24 = vstv %s1183_s2  ;;  %v434_v28 = vmul.f32 %v979_v19, %v215_v44 }
  0xc3   : > { %v440_v36 = vmul.f32 %v996_v25, %v222_v53  ;;  %v305_v38 = vadd.f32 %v304_v59, %v300_v12  ;;  %v350_v30 = vmul.f32 %v1023_v35, %v349_v2  ;;  %v423_v41 = vmul.f32 %v1231_v45, %v201_v43 }
  0xc4   : > { %v416_v40 = vadd.f32 %v415_v8, %v412_v56  ;;  %v341_v48 = vadd.f32 %v340_v1, %v336_v27  ;;  %v359_v16 = vstv %s1199_s0  ;;  %v437_v44 = vadd.f32 %v434_v28, %v218_v51  ;;  %s134_s0 = sadd.s32 1, %s1404_s3  }
  0xc5   : > { %v444_v53 = vmul.f32 %v1020_v34, %v227_v54  ;;  %v310_v49 = vadd.f32 %v309_v33, %v305_v38  ;;  %v355_v35 = vmul.f32 %v1052_v46, %v354_v24  ;;  %v427_v43 = vmul.f32 %v1244_v26, %v206_v52  ;;  %p131_p10 = scmp.ge.s32.totalorder %s134_s0, 2  }
  0xc6   : > { %v420_v58 = vadd.f32 %v419_v23, %v416_v40  ;;  %v346_v59 = vadd.f32 %v345_v42, %v341_v48  ;;  %v441_v57 = vadd.f32 %v440_v36, %v437_v44  ;;  %v448_v20 = vmul.f32 %v1126_v21, %v232_v55  ;;  %s866_s5 = smov (%p131_p10), [#allocation8]  }
  0xc7   : > { %v475_v51 = vmul.f32 %v979_v19, %v266_v7  ;;  %708 = vst.msk [vmem:[%s1160_s24 + $0x20] sm:$0xff] %vm44_vm0, %v310_v49  ;;  %v360_v46 = vmul.f32 %v1055_v47, %v359_v16  ;;  %v452_v52 = vmul.f32 %v1186_v5, %v237_v61  ;;  %v481_v55 = vmul.f32 %v996_v25, %v273_v17  ;;  %s560_s14 = sshll.u32 (%p131_p10), %s866_s5, 4  ;;  %s561_s14 = int_to_ptr.vmem [resolvable:$true] %s560_s14 }
  0xc8   : > { %v424_v54 = vadd.f32 %v423_v41, %v420_v58  ;;  %v351_v33 = vadd.f32 %v350_v30, %v346_v59  ;;  %v445_v1 = vadd.f32 %v444_v53, %v441_v57  ;;  %v485_v8 = vmul.f32 %v1020_v34, %v278_v18  ;;  %s825_s16 = scalar_lea.vmem (%p131_p10), %s561_s14, 2048  ;;  %p830_p12 = scmp.lt.s32.totalorder (%p131_p10), %s561_s14, %s561_s14 }
  0xc9   : > { %v478_v7 = vadd.f32 %v475_v51, %v269_v15  ;;  %v456_v12 = vmul.f32 %v1206_v39, %v242_v62  ;;  %v489_v17 = vmul.f32 %v1126_v21, %v283_v31  ;;  %v460_v15 = vmul.f32 %v1216_v29, %v247_v6  ;;  %p826_p11 = scmp.ne.s32.totalorder (%p131_p10), %s561_s14, %s825_s16  ;;  %p831_p13 = scmp.lt.s32.totalorder (%p131_p10), %s825_s16, %s825_s16 }
  0xca   : > { %v428_v47 = vadd.f32 %v427_v43, %v424_v54  ;;  %v356_v42 = vadd.f32 %v355_v35, %v351_v33  ;;  %v449_v61 = vadd.f32 %v448_v20, %v445_v1  ;;  %v516_v18 = vmul.f32 %v979_v19, %v317_v63 }
  0xcb   : > { %v482_v56 = vadd.f32 %v481_v55, %v478_v7  ;;  %v522_v62 = vmul.f32 %v996_v25, %v324_v3  ;;  %v493_v31 = vmul.f32 %v1186_v5, %v288_v32  ;;  %v526_v6 = vmul.f32 %v1020_v34, %v329_v4  ;;  %p832_p0 = por (%p131_p10), %p831_p13, %p830_p12 }
  0xcc   : > { %748 = vst.msk [vmem:[%s1160_s24 + $0x40] sm:$0xff] %vm44_vm0, %v428_v47  ;;  %v361_v23 = vadd.f32 %v360_v46, %v356_v42  ;;  %v453_v27 = vadd.f32 %v452_v52, %v449_v61  ;;  %v519_v36 = vadd.f32 %v516_v18, %v320_v0  ;;  %v464_v25 = vmul.f32 %v1231_v45, %v252_v10 }
  0xcd   : > { %v486_v28 = vadd.f32 %v485_v8, %v482_v56  ;;  %v497_v3 = vmul.f32 %v1206_v39, %v293_v37  ;;  %v530_v32 = vmul.f32 %v1126_v21, %v334_v22  ;;  %v468_v34 = vmul.f32 %v1244_v26, %v257_v11  ;;  %p833_p1 = pnand (%p131_p10), %p832_p0, %p826_p11 }
  0xce   : > { %720 = vst.msk [vmem:[%s1160_s24 + $0x30] sm:$0xff] %vm44_vm0, %v361_v23  ;;  %v457_v19 = vadd.f32 %v456_v12, %v453_v27  ;;  %v523_v38 = vadd.f32 %v522_v62, %v519_v36  ;;  %v501_v30 = vmul.f32 %v1216_v29, %v298_v60  ;;  %v534_v37 = vmul.f32 %v1186_v5, %v339_v14 }
  0xcf   : > { %v490_v63 = vadd.f32 %v489_v17, %v486_v28  ;;  %v505_v21 = vmul.f32 %v1231_v45, %v303_v9  ;;  %v538_v11 = vmul.f32 %v1206_v39, %v344_v50  ;;  %v509_v60 = vmul.f32 %v1244_v26, %v308_v13 }
  0xd0   : > { %v461_v0 = vadd.f32 %v460_v15, %v457_v19  ;;  %v527_v10 = vadd.f32 %v526_v6, %v523_v38  ;;  %v542_v5 = vmul.f32 %v1216_v29, %v349_v2  ;;  %v546_v9 = vmul.f32 %v1231_v45, %v354_v24 }
  0xd1   : > { %v494_v4 = vadd.f32 %v493_v31, %v490_v63  ;;  %v550_v39 = vmul.f32 %v1244_v26, %v359_v16 }
  0xd2   : > { %v465_v40 = vadd.f32 %v464_v25, %v461_v0  ;;  %v531_v22 = vadd.f32 %v530_v32, %v527_v10 }
  0xd3   : > { %v498_v41 = vadd.f32 %v497_v3, %v494_v4 }
  0xd4   : > { %v469_v48 = vadd.f32 %v468_v34, %v465_v40  ;;  %v535_v53 = vadd.f32 %v534_v37, %v531_v22 }
  0xd5   : > { %v502_v44 = vadd.f32 %v501_v30, %v498_v41 }
  0xd6   : > { %760 = vst.msk [vmem:[%s1160_s24 + $0x50] sm:$0xff] %vm44_vm0, %v469_v48  ;;  %v539_v49 = vadd.f32 %v538_v11, %v535_v53 }
  0xd7   : > { %v506_v14 = vadd.f32 %v505_v21, %v502_v44 }
  0xd8   : > { %v543_v58 = vadd.f32 %v542_v5, %v539_v49  ;;  %133 = sbr.rel (!%p131_p10) target bundleno = 159 (0x9f), region = 83 }
  0xd9   : > { %v510_v35 = vadd.f32 %v509_v60, %v506_v14 }
  0xda   : > { %v547_v50 = vadd.f32 %v546_v9, %v543_v58 }
  0xdb   : > { %772 = vst.msk [vmem:[%s1160_s24 + $0x60] sm:$0xff] %vm44_vm0, %v510_v35 }
  0xdc   : > { %v551_v13 = vadd.f32 %v550_v39, %v547_v50 }
  0xde   : > { %784 = vst.msk [vmem:[%s1160_s24 + $0x70] sm:$0xff] %vm44_vm0, %v551_v13 }
  0xdf   :  { %836 = shalt.err (!%p833_p1)
}
  0xe0   :  { %s1405_s19 = sld [smem:[#allocation19_spill]] }
  0xe6   :  { %s837_s20 = scalar_lea.hbm %s1405_s19, 2048 }
  0xe7   :  { %p838_p2 = scmp.ne.s32.totalorder %s1405_s19, %s837_s20  ;;  %p841_p3 = scmp.lt.u32.totalorder %s837_s20, %s1405_s19 }
  0xe9   :  { %p843_p4 = pnand %p841_p3, %p838_p2 }
  0xeb   :  { %846 = shalt.err (!%p843_p4)
}
  0xec   :  { %s867_s23 = smov 128   ;;  %s868_s24 = smov 8  }
  0xed   :  { %566 = dma.vmem_to_hbm [thread:$0]  %s561_s14, 2048, %s1405_s19, [#allocation4], %s867_s23, %s867_s23, %s868_s24  }
  0xee   :  { %855 = dma.done.wait [#allocation4], 2048  }
  0xef   :  { %856 = vsyncadd [#allocation4], 4294965248 }
  0xf0   :  { %570 = vsyncpa [#allocation4], 1 }
  0xf1   :  { %571 = vsyncpa [#allocation5], 1 }
  0xf2   :  { %572 = vsyncpa [#allocation7], 1 }

</bundles_post_ra>
